<compile_context>
chip_gen: v7x
topology: tpu7x:2x2x1
jax: 0.10.0
libtpu: 0.0.40
codegen_flags: <defaults>
</compile_context>

<pallas_src>
import math

import jax
import jax.numpy as jnp
from jax import lax
from jax.experimental import pallas as pl
from jax.experimental.pallas import tpu as pltpu


_VMEM_CEILING_BYTES = 40 << 20  # conservative: leaves headroom on v7x (64 MiB)


def _pick_block(dim, target, align):
    """Largest multiple of `align` that divides `dim` and is <= `target`.

    Falls back to the full dimension (always a legal block) when no aligned
    divisor exists or when dim <= target.
    """
    if dim <= target:
        return dim
    t = (target // align) * align
    while t >= align:
        if dim % t == 0:
            return t
        t -= align
    return dim


def _vmem_limit(est_bytes):
    assert est_bytes <= _VMEM_CEILING_BYTES, (
        f"tile choice needs ~{est_bytes / 2**20:.1f} MiB VMEM, above the "
        f"{_VMEM_CEILING_BYTES >> 20} MiB budget; shrink the tiles")
    return int(min(max(2 * est_bytes, 16 << 20), _VMEM_CEILING_BYTES))


# ---------------------------------------------------------------------------
# Tiled linear:  y = x @ W + b   with a k-grid reduction axis + f32 accumulator
# ---------------------------------------------------------------------------
def _make_linear_kernel(mxu_dtype):
    def kernel(x_ref, w_ref, b_ref, o_ref, acc_ref):
        k = pl.program_id(2)

        @pl.when(k == 0)
        def _():
            acc_ref[...] = jnp.zeros(acc_ref.shape, jnp.float32)

        acc_ref[...] += jnp.dot(
            x_ref[...].astype(mxu_dtype),
            w_ref[...].astype(mxu_dtype),
            preferred_element_type=jnp.float32)

        @pl.when(k == pl.num_programs(2) - 1)
        def _():
            o_ref[...] = (acc_ref[...]
                          + b_ref[...].astype(jnp.float32)).astype(o_ref.dtype)

    return kernel


def _linear(x, w, b, *, mxu_dtype, out_dtype=None, tm=256, tn=512, tk=512):
    """x: [M, K], w: [K, N] (pre-transposed for x @ W), b: [N] -> [M, N]."""
    M, K = x.shape
    Kw, N = w.shape
    assert K == Kw and b.shape == (N,)
    if out_dtype is None:
        out_dtype = x.dtype
    tm = _pick_block(M, tm, 8)
    tn = _pick_block(N, tn, 128)
    tk = _pick_block(K, tk, 128)
    grid = (M // tm, N // tn, K // tk)

    x_elt = jnp.dtype(x.dtype).itemsize
    w_elt = jnp.dtype(w.dtype).itemsize
    o_elt = jnp.dtype(out_dtype).itemsize
    est = (2 * (tm * tk * x_elt + tk * tn * w_elt + tn * 4)
           + 2 * tm * tn * o_elt + tm * tn * 4)

    return pl.pallas_call(
        _make_linear_kernel(mxu_dtype),
        out_shape=jax.ShapeDtypeStruct((M, N), out_dtype),
        grid_spec=pltpu.PrefetchScalarGridSpec(
            num_scalar_prefetch=0,
            grid=grid,
            in_specs=[
                pl.BlockSpec((tm, tk), lambda i, j, k: (i, k)),   # x tile
                pl.BlockSpec((tk, tn), lambda i, j, k: (k, j)),   # W tile
                pl.BlockSpec((1, tn), lambda i, j, k: (0, j)),    # bias tile
            ],
            out_specs=pl.BlockSpec((tm, tn), lambda i, j, k: (i, j)),
            scratch_shapes=[pltpu.VMEM((tm, tn), jnp.float32)],
        ),
        compiler_params=pltpu.CompilerParams(
            dimension_semantics=("parallel", "parallel", "arbitrary"),
            vmem_limit_bytes=_vmem_limit(est)),
    )(x, w, b.reshape(1, N))


# ---------------------------------------------------------------------------
# Flash attention reading Q/K/V straight out of the fused [b*s, 3h] activation
# and writing the merged-head context [b*s, h] (no transposes in XLA).
# ---------------------------------------------------------------------------
def _make_flash_kernel(block_q, block_k, mxu_dtype):
    def kernel(q_ref, k_ref, v_ref, o_ref, m_ref, l_ref, acc_ref):
        q_idx = pl.program_id(1)
        kv_idx = pl.program_id(2)

        @pl.when(kv_idx == 0)
        def _():
            m_ref[...] = jnp.full(m_ref.shape, -jnp.inf, jnp.float32)
            l_ref[...] = jnp.zeros(l_ref.shape, jnp.float32)
            acc_ref[...] = jnp.zeros(acc_ref.shape, jnp.float32)

        q_lo = q_idx * block_q
        q_hi = q_lo + (block_q - 1)
        k_lo = kv_idx * block_k
        k_hi = k_lo + (block_k - 1)
        run = k_lo <= q_hi        # tile not entirely above the causal diagonal
        on_diag = k_hi > q_lo     # tile straddles the diagonal -> needs mask

        def update(masked):
            # 1/sqrt(hd) already folded into the QKV weights (wrapper).
            q = q_ref[...].astype(mxu_dtype)                      # [tq, hd]
            k = k_ref[...].astype(mxu_dtype)                      # [tk, hd]
            # Contract last dims directly -> no explicit K transpose.
            s = lax.dot_general(
                q, k, (((1,), (1,)), ((), ())),
                preferred_element_type=jnp.float32)               # [tq, tk]
            if masked:
                # Only diagonal-crossing tiles pay for iota/compare/select.
                # where(mask, s, -10000) == s*mask - 10000*(1-mask) for 0/1 mask.
                rows = q_lo + lax.broadcasted_iota(
                    jnp.int32, (block_q, block_k), 0)
                cols = k_lo + lax.broadcasted_iota(
                    jnp.int32, (block_q, block_k), 1)
                s = jnp.where(rows >= cols, s, -10000.0)

            m_prev = m_ref[...]
            m_new = jnp.maximum(m_prev, jnp.max(s, axis=-1, keepdims=True))
            alpha = jnp.exp(m_prev - m_new)
            p = jnp.exp(s - m_new)                                # f32 probs
            l_ref[...] = alpha * l_ref[...] + jnp.sum(p, axis=-1, keepdims=True)
            acc_ref[...] = alpha * acc_ref[...] + jnp.dot(
                p.astype(mxu_dtype), v_ref[...].astype(mxu_dtype),
                preferred_element_type=jnp.float32)
            m_ref[...] = m_new

        @pl.when(jnp.logical_and(run, on_diag))
        def _():
            update(masked=True)

        @pl.when(jnp.logical_and(run, jnp.logical_not(on_diag)))
        def _():
            update(masked=False)

        @pl.when(kv_idx == pl.num_programs(2) - 1)
        def _():
            inv_l = pl.reciprocal(l_ref[...], approx=True)        # EUP slot
            o_ref[...] = (acc_ref[...] * inv_l).astype(o_ref.dtype)

    return kernel


def _flash_attention_qkv(qkv, batch, seq, num_heads, head_dim, *,
                         mxu_dtype, out_dtype, block_q=256, block_k=512):
    """qkv: [b*s, 3h] with columns [Q | K | V] -> context [b*s, h]."""
    bs, three_h = qkv.shape
    h = num_heads * head_dim
    assert three_h == 3 * h and bs == batch * seq
    assert head_dim % 128 == 0, "direct QKV-layout kernel needs head_dim % 128 == 0"

    block_q = _pick_block(seq, block_q, 16)
    block_k = _pick_block(seq, block_k, 128)
    assert block_q % 8 == 0 and block_k % 8 == 0
    q_blocks = seq // block_q
    kv_blocks = seq // block_k
    grid = (batch * num_heads, q_blocks, kv_blocks)   # (B*NH) leading parallel

    def q_map(bh, i, j):
        return ((bh // num_heads) * q_blocks + i, bh % num_heads)

    def _kv_map(bh, i, j, col_off):
        # Clamp causally-skipped kv steps to the previous block index so the
        # pipeline suppresses the K/V DMA for those steps.
        j_c = jnp.minimum(j, ((i + 1) * block_q - 1) // block_k)
        return ((bh // num_heads) * kv_blocks + j_c, col_off + bh % num_heads)

    def k_map(bh, i, j):
        return _kv_map(bh, i, j, num_heads)

    def v_map(bh, i, j):
        return _kv_map(bh, i, j, 2 * num_heads)

    in_elt = jnp.dtype(qkv.dtype).itemsize
    o_elt = jnp.dtype(out_dtype).itemsize
    est = (2 * (block_q + 2 * block_k) * head_dim * in_elt
           + 2 * block_q * head_dim * o_elt
           + block_q * (head_dim + 2) * 4)

    return pl.pallas_call(
        _make_flash_kernel(block_q, block_k, mxu_dtype),
        out_shape=jax.ShapeDtypeStruct((bs, h), out_dtype),
        grid_spec=pltpu.PrefetchScalarGridSpec(
            num_scalar_prefetch=0,
            grid=grid,
            in_specs=[
                pl.BlockSpec((block_q, head_dim), q_map),   # Q column block
                pl.BlockSpec((block_k, head_dim), k_map),   # K column block
                pl.BlockSpec((block_k, head_dim), v_map),   # V column block
            ],
            out_specs=pl.BlockSpec((block_q, head_dim), q_map),
            scratch_shapes=[
                pltpu.VMEM((block_q, 1), jnp.float32),        # running max
                pltpu.VMEM((block_q, 1), jnp.float32),        # running denom
                pltpu.VMEM((block_q, head_dim), jnp.float32),  # context acc
            ],
        ),
        compiler_params=pltpu.CompilerParams(
            dimension_semantics=("parallel", "parallel", "arbitrary"),
            vmem_limit_bytes=_vmem_limit(est)),
    )(qkv, qkv, qkv)


# ---------------------------------------------------------------------------
# Full GPT3SelfAttention forward.
# ---------------------------------------------------------------------------
def gpt3_self_attention(hidden_states, ltor_mask, w_qkv, b_qkv, w_dense,
                        b_dense, num_heads, *, mxu_dtype=None,
                        block_q=256, block_k=512,
                        linear_tiles=(256, 512, 512)):
    """hidden_states: [b, s, h]; ltor_mask: causal mask (regenerated in-kernel).

    w_qkv: [h, 3h], w_dense: [h, h] (pre-transposed for x @ W).
    mxu_dtype: dtype for MXU operands (e.g. jnp.bfloat16); softmax statistics
    and matmul accumulation stay in f32 regardless.
    """
    del ltor_mask  # causal mask is generated in-kernel from iota (see TODO).
    b, s, h = hidden_states.shape
    assert h % num_heads == 0
    hd = h // num_heads
    if mxu_dtype is None:
        mxu_dtype = hidden_states.dtype
    mxu_is_bf16 = jnp.dtype(mxu_dtype) == jnp.dtype(jnp.bfloat16)
    act_dtype = jnp.bfloat16 if mxu_is_bf16 else hidden_states.dtype
    tm, tn, tk = linear_tiles

    # Fold 1/sqrt(hd) into the Q columns of the QKV projection (one-time
    # weight transform) so the flash kernel does no per-step Q scaling.
    scale = 1.0 / math.sqrt(hd)
    w_qkv = w_qkv.at[:, :h].multiply(scale)
    b_qkv = b_qkv.at[:h].multiply(scale)

    # One-time weight cast for the bf16 MXU path (halves weight HBM traffic).
    if w_qkv.dtype != jnp.dtype(mxu_dtype):
        w_qkv = w_qkv.astype(mxu_dtype)
        w_dense = w_dense.astype(mxu_dtype)

    # 1) Fused QKV projection (k-tiled, f32 accumulation).
    x2d = hidden_states.reshape(b * s, h)
    qkv = _linear(x2d, w_qkv, b_qkv, mxu_dtype=mxu_dtype, out_dtype=act_dtype,
                  tm=tm, tn=tn, tk=tk)                            # [b*s, 3h]

    # 2+3) Flash attention reads Q/K/V directly out of the [b*s, 3h] layout
    #      and writes the merged-head context [b*s, h] (no XLA transposes).
    ctx = _flash_attention_qkv(qkv, b, s, num_heads, hd,
                               mxu_dtype=mxu_dtype, out_dtype=act_dtype,
                               block_q=block_q, block_k=block_k)  # [b*s, h]

    # 4) Output dense (k-tiled), back to the input dtype.
    out = _linear(ctx, w_dense, b_dense, mxu_dtype=mxu_dtype,
                  out_dtype=hidden_states.dtype, tm=tm, tn=tn, tk=tk)
    return out.reshape(b, s, h)


# ---------------------------------------------------------------------------
# Pure-JAX reference mirroring the PyTorch forward (eval mode).
# ---------------------------------------------------------------------------
def reference(hidden_states, ltor_mask, w_qkv, b_qkv, w_dense, b_dense,
              num_heads):
    b, s, h = hidden_states.shape
    hn = h // num_heads
    mask = jnp.reshape(ltor_mask, (1, 1, s, s)).astype(jnp.float32)
    qkv = hidden_states @ w_qkv + b_qkv                           # [b, s, 3h]
    q, k, v = jnp.split(qkv, 3, axis=-1)

    def to_heads(t):
        return t.reshape(b, s, num_heads, hn).transpose(0, 2, 1, 3)

    q, k, v = to_heads(q), to_heads(k), to_heads(v)
    scores = jnp.einsum("bnqd,bnkd->bnqk", q, k) / math.sqrt(hn)
    converted = 10000.0 * (1.0 - mask)
    scores = scores * mask - converted
    probs = jax.nn.softmax(scores, axis=-1)
    ctx = jnp.einsum("bnqk,bnkd->bnqd", probs, v)
    ctx = ctx.transpose(0, 2, 1, 3).reshape(b, s, h)
    return ctx @ w_dense + b_dense


if __name__ == "__main__":
    # Small-but-aligned config: batch=2, seq=256, hidden=512, heads=4 (hd=128).
    B, S, H, NH = 2, 256, 512, 4

    key = jax.random.PRNGKey(0)
    k1, k2, k3, k4, k5 = jax.random.split(key, 5)

    hidden_states = jax.random.normal(k1, (B, S, H), dtype=jnp.float32)
    # Causal (lower-triangular) mask, as the module expects: [1, 1, S, S].
    ltor_mask = jnp.tril(jnp.ones((S, S), dtype=jnp.float32)).reshape(1, 1, S, S)

    # Synthetic parameters (nn.Linear(h, 3h) / nn.Linear(h, h)), pre-transposed.
    w_qkv = 0.05 * jax.random.normal(k2, (H, 3 * H), dtype=jnp.float32)
    b_qkv = 0.05 * jax.random.normal(k3, (3 * H,), dtype=jnp.float32)
    w_dense = 0.05 * jax.random.normal(k4, (H, H), dtype=jnp.float32)
    b_dense = 0.05 * jax.random.normal(k5, (H,), dtype=jnp.float32)

    ref = reference(hidden_states, ltor_mask, w_qkv, b_qkv, w_dense, b_dense, NH)

    # f32 path, default (large) tiles.
    out = gpt3_self_attention(hidden_states, ltor_mask, w_qkv, b_qkv,
                              w_dense, b_dense, NH)
    out = jax.block_until_ready(out)
    assert out.shape == (B, S, H)
    err = jnp.max(jnp.abs(out - ref))
    assert jnp.allclose(out, ref, atol=2e-2, rtol=2e-2), f"max abs err = {err}"

    # f32 path, small tiles: exercises multi-tile kv loop, causal-tile DMA
    # clamping, the unmasked interior branch and the k-grid reduction.
    out_small = gpt3_self_attention(hidden_states, ltor_mask, w_qkv, b_qkv,
                                    w_dense, b_dense, NH,
                                    block_q=128, block_k=128,
                                    linear_tiles=(128, 256, 256))
    out_small = jax.block_until_ready(out_small)
    err_small = jnp.max(jnp.abs(out_small - ref))
    assert jnp.allclose(out_small, ref, atol=2e-2, rtol=2e-2), (
        f"small-tile max abs err = {err_small}")

    # bf16 MXU operands + bf16 intermediate activations, f32 stats/accumulators.
    out_bf16 = gpt3_self_attention(hidden_states, ltor_mask, w_qkv, b_qkv,
                                   w_dense, b_dense, NH,
                                   mxu_dtype=jnp.bfloat16)
    out_bf16 = jax.block_until_ready(out_bf16)
    err_bf16 = jnp.max(jnp.abs(out_bf16 - ref))
    assert jnp.allclose(out_bf16, ref, atol=1e-1, rtol=1e-1), (
        f"bf16 max abs err = {err_bf16}")

    print("KERNEL_OK")
</pallas_src>

<mosaic_0001>
module attributes {stable_mosaic.version = 11 : i64} {
  func.func @kernel(%arg0: i32, %arg1: i32, %arg2: i32, %arg3: memref<256x512xf32, #tpu.memory_space<vmem>>, %arg4: memref<512x512xf32, #tpu.memory_space<vmem>>, %arg5: memref<1x512xf32, #tpu.memory_space<vmem>>, %arg6: memref<256x512xf32, #tpu.memory_space<vmem>>, %arg7: memref<256x512xf32, #tpu.memory_space<vmem>>) attributes {dimension_semantics = [#tpu.dimension_semantics<parallel>, #tpu.dimension_semantics<parallel>, #tpu.dimension_semantics<arbitrary>], iteration_bounds = array<i64: 2, 3, 1>, scalar_prefetch = 0 : i64, scratch_operands = 1 : i64, tpu.core_type = #tpu.core_type<tc>, window_params = [{transform_indices = @transform_0, window_bounds = array<i64: 256, 512>}, {transform_indices = @transform_1, window_bounds = array<i64: 512, 512>}, {transform_indices = @transform_2, window_bounds = array<i64: 1, 512>}, {transform_indices = @transform_3, window_bounds = array<i64: 256, 512>}]} {
    %c0_i32 = arith.constant 0 : i32
    %0 = arith.cmpi eq, %arg2, %c0_i32 : i32
    %1 = arith.extui %0 : i1 to i32
    %c0_i32_0 = arith.constant 0 : i32
    %2 = arith.cmpi ne, %1, %c0_i32_0 : i32
    scf.if %2 {
      %cst_10 = arith.constant 0.000000e+00 : f32
      %12 = vector.broadcast %cst_10 : f32 to vector<256x512xf32>
      %c0_11 = arith.constant 0 : index
      %c0_12 = arith.constant 0 : index
      %13 = vector.load %arg7[%c0_11, %c0_12] : memref<256x512xf32, #tpu.memory_space<vmem>>, vector<256x512xf32>
      tpu.vector_store %arg7[%c0_11, %c0_12], %12 {strides = array<i32>} : memref<256x512xf32, #tpu.memory_space<vmem>>, vector<256x512xf32>,
    } else {
    }
    %c0 = arith.constant 0 : index
    %c0_1 = arith.constant 0 : index
    %3 = vector.load %arg7[%c0, %c0_1] : memref<256x512xf32, #tpu.memory_space<vmem>>, vector<256x512xf32>
    %c0_2 = arith.constant 0 : index
    %c0_3 = arith.constant 0 : index
    %4 = vector.load %arg3[%c0_2, %c0_3] : memref<256x512xf32, #tpu.memory_space<vmem>>, vector<256x512xf32>
    %c0_4 = arith.constant 0 : index
    %c0_5 = arith.constant 0 : index
    %5 = vector.load %arg4[%c0_4, %c0_5] : memref<512x512xf32, #tpu.memory_space<vmem>>, vector<512x512xf32>
    %cst = arith.constant dense<0.000000e+00> : vector<256x512xf32>
    %6 = tpu.matmul %4, %5, %cst {dimension_numbers = #tpu.dot_dimension_numbers<[1], [0], [0], [1], [0, 0, 1, 1], [], []>} : vector<256x512xf32>, vector<512x512xf32>, vector<256x512xf32> -> vector<256x512xf32>
    %7 = arith.addf %3, %6 : vector<256x512xf32>
    %c0_6 = arith.constant 0 : index
    %c0_7 = arith.constant 0 : index
    %8 = vector.load %arg7[%c0_6, %c0_7] : memref<256x512xf32, #tpu.memory_space<vmem>>, vector<256x512xf32>
    tpu.vector_store %arg7[%c0_6, %c0_7], %7 {strides = array<i32>} : memref<256x512xf32, #tpu.memory_space<vmem>>, vector<256x512xf32>,
    %c0_i32_8 = arith.constant 0 : i32
    %9 = arith.cmpi eq, %arg2, %c0_i32_8 : i32
    %10 = arith.extui %9 : i1 to i32
    %c0_i32_9 = arith.constant 0 : i32
    %11 = arith.cmpi ne, %10, %c0_i32_9 : i32
    scf.if %11 {
      %c0_10 = arith.constant 0 : index
      %c0_11 = arith.constant 0 : index
      %12 = vector.load %arg7[%c0_10, %c0_11] : memref<256x512xf32, #tpu.memory_space<vmem>>, vector<256x512xf32>
      %c0_12 = arith.constant 0 : index
      %c0_13 = arith.constant 0 : index
      %13 = vector.load %arg5[%c0_12, %c0_13] : memref<1x512xf32, #tpu.memory_space<vmem>>, vector<1x512xf32>
      %14 = vector.broadcast %13 : vector<1x512xf32> to vector<256x512xf32>
      %15 = arith.addf %12, %14 : vector<256x512xf32>
      %c0_14 = arith.constant 0 : index
      %c0_15 = arith.constant 0 : index
      %16 = vector.load %arg6[%c0_14, %c0_15] : memref<256x512xf32, #tpu.memory_space<vmem>>, vector<256x512xf32>
      tpu.vector_store %arg6[%c0_14, %c0_15], %15 {strides = array<i32>} : memref<256x512xf32, #tpu.memory_space<vmem>>, vector<256x512xf32>,
    } else {
    }
    return
  }
  func.func @transform_0(%arg0: i32, %arg1: i32, %arg2: i32) -> (i32, i32) {
    %c0_i32 = arith.constant 0 : i32
    return %arg0, %arg2 : i32, i32
  }
  func.func @transform_1(%arg0: i32, %arg1: i32, %arg2: i32) -> (i32, i32) {
    %c0_i32 = arith.constant 0 : i32
    return %arg2, %arg1 : i32, i32
  }
  func.func @transform_2(%arg0: i32, %arg1: i32, %arg2: i32) -> (i32, i32) {
    %c0_i32 = arith.constant 0 : i32
    %c0_i32_0 = arith.constant 0 : i32
    return %c0_i32, %arg1 : i32, i32
  }
  func.func @transform_3(%arg0: i32, %arg1: i32, %arg2: i32) -> (i32, i32) {
    %c0_i32 = arith.constant 0 : i32
    return %arg0, %arg1 : i32, i32
  }
}

</mosaic_0001>

<bundles_post_ra>
// kernel: tpu_custom_call.1
= control target key start
LH: loop header
LB: loop body
LE: loop exit
PB: predicated region body
PF: predicated region fallthrough
CT: control target
= control target key end

     0   :  { %s4675_s0 = inlined_call_operand.hbm [shape: f32[512,512], index: 0, kind: input, shape index: {}]   ;;  %s4676_s1 = inlined_call_operand.hbm [shape: f32[512,1536], index: 1, kind: input, shape index: {}]   ;;  %s4677_s2 = inlined_call_operand.hbm [shape: f32[1,1536], index: 2, kind: input, shape index: {}]   ;;  %s4678_s3 = inlined_call_operand.hbm [shape: f32[512,1536], index: 3, kind: output, shape index: {}]  }
   0x1   :  { %4696 = sst [smem:[#allocation25_spill]] %s4676_s1 }
   0x2   :  { %4697 = sst [smem:[#allocation26_spill]] %s4678_s3 }
   0x3   :  { %8 = vsyncpa [#allocation4], 0 }
   0x4   :  { %10 = vsyncpa [#allocation4 + $0x1], 0 }
   0x5   :  { %11 = vsyncpa [#allocation7], 0 }
   0x6   :  { %13 = vsyncpa [#allocation7 + $0x1], 0 }
   0x7   :  { %14 = vsyncpa [#allocation5], 0 }
   0x8   :  { %16 = vsyncpa [#allocation5 + $0x1], 0  ;;  %s3624_s12 = smov 0   ;;  %s3626_s13 = smov 0  }
   0x9   :  { %s3628_s14 = smov 0   ;;  %s3630_s15 = smov 0  }
   0xa   :  { %s3632_s16 = smov 0   ;;  %s3634_s17 = smov 0  }
   0xb   :  { %s3636_s18 = smov 0   ;;  %s3638_s19 = smov 0  }
   0xc   :  { %s3640_s20 = smov 0   ;;  %s3642_s21 = smov 0  }
   0xd   :  { %s3644_s22 = smov 0   ;;  %s3646_s23 = smov 0  }
   0xe   :  { %s3648_s24 = smov 0   ;;  %s3650_s25 = smov 0  }
   0xf LB: > { %4698 = sst [smem:[#allocation13_spill]] %s3548_s14  ;;  %s37_s26 = sadd.s32 1, %s3584_s23  ;;  %s3592_s25 = sphi %s3650_s25, %s22_s25   ;;  %s3588_s24 = sphi %s3648_s24, %s4749_s24   ;;  %s3584_s23 = sphi %s3646_s23, %s4757_s23   ;;  %s3580_s22 = sphi %s3644_s22, %s4747_s22   ;;  %s3576_s21 = sphi %s3642_s21, %s4756_s21   ;;  %s3572_s20 = sphi %s3640_s20, %s4745_s20   ;;  %s3568_s19 = sphi %s3638_s19, %s4755_s19   ;;  %s3564_s18 = sphi %s3636_s18, %s4754_s18   ;;  %s3560_s17 = sphi %s3634_s17, %s4743_s17   ;;  %s3556_s16 = sphi %s3632_s16, %s4753_s16   ;;  %s3552_s15 = sphi %s3630_s15, %s4752_s15   ;;  %s3548_s14 = sphi %s3628_s14, %s4741_s14   ;;  %s3544_s13 = sphi %s3626_s13, %s4751_s13   ;;  %s3540_s12 = sphi %s3624_s12, %s4750_s12  }
  0x10   : > { %4699 = sst [smem:[#allocation14_spill]] %s3560_s17  ;;  %p4681_p0 = scmp.eq.s32.totalorder %s3592_s25, 0 }
  0x11   : > { %4700 = sst [smem:[#allocation15_spill]] %s3572_s20  ;;  %p3698_p1 = scmp.ge.s32.totalorder %s37_s26, 3 }
  0x12   : > { %4701 = sst [smem:[#allocation16_spill]] %s3576_s21  ;;  %p85_p2 = scmp.ne.s32.totalorder %s3560_s17, %s3556_s16 }
  0x13   : > { %4702 = sst [smem:[#allocation17_spill]] %s3580_s22  ;;  %p4680_p4 = scmp.lt.s32.totalorder %s3592_s25, 6 }
  0x14   : > { %4703 = sst [smem:[#allocation18_spill]] %s3584_s23  ;;  %p87_p5 = por %p85_p2, %p4681_p0 }
  0x15   : > { %4704 = sst [smem:[#allocation19_spill]] %s3588_s24  ;;  %s193_s29 = sand.u32 1, %s3592_s25  }
  0x16   : > { %s4679_s30 = sand.u32 1, %s3560_s17   ;;  %s2823_s5 = sshll.u32 %s3584_s23, 9 }
  0x17   : > { %s2803_s4 = sshll.u32 %s4679_s30, 11  ;;  %s4706_s1 = sld [smem:[#allocation25_spill]] }
  0x18   : > { %s197_s9 = scalar_lea.vmem [#allocation6], %s2803_s4  ;;  %p3722_p6 = pnand %p4680_p4, %p87_p5 }
  0x19   : > { %s207_s10 = sshll.u32 %s197_s9, 4  ;;  %s3729_s30 = scalar_lea.sflag [#allocation7], %s193_s29  ;;  %s3726_s10 = int_to_ptr.vmem [resolvable:$true] %s207_s10 }
  0x1a   : > { %p4692_p9 = pneg %p3722_p6 }
  0x1d   : > { %s3718_s8 = scalar_lea.hbm %s4706_s1, %s2823_s5  ;;  %s3357_s7 = scalar_lea.hbm %s4706_s1, 98304 }
  0x1e   : > { %s3352_s5 = scalar_lea.hbm %s3718_s8, 32768  ;;  %p3358_p12 = scmp.lt.u32.totalorder %s3718_s8, %s4706_s1 }
  0x1f   : > { %p3353_p8 = scmp.ne.s32.totalorder %s3718_s8, %s3352_s5  ;;  %p3359_p13 = scmp.lt.u32.totalorder %s3357_s7, %s3352_s5 }
  0x20   : > { %p3361_p5 = scmp.lt.u32.totalorder %s3352_s5, %s3718_s8 }
  0x21   : > { %p3355_p10 = pnand %p4692_p9, %p3353_p8  ;;  %p3360_p2 = por %p3359_p13, %p3358_p12 }
  0x23   : > { %p3356_p11 = pneg %p3355_p10  ;;  %p3362_p4 = por %p3361_p5, %p3360_p2 }
  0x25   : > { %p3363_p3 = pnand %p3362_p4, %p3356_p11 }
  0x27   : > { %3366 = shalt.err (!%p3363_p3)
}
  0x28   : > { %s3367_s29 = scalar_lea.vmem %s3726_s10, 32768  ;;  %s3594_s4 = smov [#allocation6]  }
  0x29   : > { %p3368_p8 = scmp.ne.s32.totalorder %s3726_s10, %s3367_s29  ;;  %s3372_s6 = sshll.u32 %s3594_s4, 4  ;;  %s3373_s6 = int_to_ptr.vmem [resolvable:$false] %s3372_s6 }
  0x2a   : > { %s3374_s28 = scalar_lea.vmem %s3373_s6, 65536  ;;  %p3375_p7 = scmp.lt.s32.totalorder %s3726_s10, %s3373_s6 }
  0x2b   : > { %p3370_p10 = pnand %p3368_p8, %p4692_p9  ;;  %p3376_p12 = scmp.lt.s32.totalorder %s3374_s28, %s3367_s29 }
  0x2d   : > { %p3371_p0 = pneg %p3370_p10  ;;  %p3377_p13 = por %p3376_p12, %p3375_p7 }
  0x2f   : > { %p3378_p2 = pnand %p3377_p13, %p3371_p0 }
  0x31   : > { %3381 = shalt.err (!%p3378_p2)
}
  0x32   : > { %s3595_s5 = smov 1536   ;;  %s4682_s7 = smov 512  }
  0x33   : > { %s4683_s9 = smov 32   ;;  %p234_p0 = scmp.lt.s32.totalorder %s3592_s25, 7 }
  0x34   : > { %3224 = dma.hbm_to_vmem [thread:$0]  (!%p3722_p6), %s3718_s8, 32768, %s3726_s10, %s3729_s30, %s3595_s5, %s4682_s7, %s4683_s9  }
  0x35   : > { %p4708_p3 = scmp.ge.s32.totalorder %s3592_s25, 1  ;;  %s3767_s4 = sadd.s32 4294967295, %s3592_s25  }
  0x36   : > { %s2796_s6 = sadd.s32 4294967294, %s3592_s25   ;;  %s4759_s26 = smov (%p3698_p1, %s37_s26), 0 }
  0x37   : > { %p3762_p4 = pnand %p4708_p3, %p234_p0  ;;  %4710 = sst [smem:[#allocation20_spill]] %s4759_s26 }
  0x38   : > { %s41_s28 = sadd.s32 1, %s3588_s24  ;;  %s50_s8 = sadd.s32 1, %s3572_s20 }
  0x39   : > { %s4709_s29 = scalar_select %p3762_p4, 1, 0 }
  0x3a   : > { %s4761_s28 = smov (!%p3698_p1, %s41_s28), %s3588_s24  ;;  %p57_p7 = scmp.ne.s32.totalorder %s3572_s20, %s3568_s19 }
  0x3b   : > { %p63_p11 = scmp.ne.s32.totalorder %s3568_s19, %s3564_s18  ;;  %p43_p5 = scmp.ge.s32.totalorder %s4761_s28, 2 }
  0x3c   : > { %p64_p8 = scmp.eq.s32.totalorder %s3767_s4, 0  ;;  %p4711_p10 = scmp.eq.s32.totalorder %s3592_s25, 0 }
  0x3d   : > { %s74_s5 = ssub.s32 %s3584_s23, %s4759_s26  ;;  %s4763_s28 = smov (%p43_p5, %s4761_s28), 0 }
  0x3e   : > { %p3788_p12 = por %p4711_p10, %p57_p7  ;;  %4713 = sst [smem:[#allocation21_spill]] %s4763_s28 }
  0x3f   : > { %p3796_p1 = por %p64_p8, %p63_p11  ;;  %p76_p13 = scmp.eq.s32.totalorder %s74_s5, 0 }
  0x40   : > { %s45_s18 = ssub.s32 %s3588_s24, %s4763_s28  ;;  %p4715_p2 = scmp.ne.s32.totalorder %s3556_s16, %s3552_s15 }
  0x41   : > { %s4714_s27 = scalar_select %p3796_p1, 1, 0 }
  0x42   : > { %p3805_p0 = por %p4715_p2, %p64_p8  ;;  %p48_p3 = scmp.eq.s32.totalorder %s45_s18, 0 }
  0x43   : > { %s129_s9 = sor.u32 %s74_s5, %s45_s18  ;;  %s4717_s1 = sadd.s32 1, %s3560_s17 }
  0x44   : > { %s4716_s7 = scalar_select %p3805_p0, 1, 0 }
  0x45   : > { %s3812_s26 = scalar_select %p76_p13, %s3560_s17, %s4717_s1  }
  0x46   : > { %s3815_s3 = scalar_select %p48_p3, %s3572_s20, %s50_s8  }
  0x47   : > { %4718 = sst [smem:[#allocation22_spill]] %s3812_s26  ;;  %p130_p7 = scmp.eq.s32.totalorder %s129_s9, 0 }
  0x48   : > { %4719 = sst [smem:[#allocation23_spill]] %s3815_s3  ;;  %s132_s21 = sadd.s32 1, %s3548_s14 }
  0x49   : > { %p142_p11 = scmp.ne.s32.totalorder %s3548_s14, %s3544_s13  ;;  %p143_p5 = scmp.eq.s32.totalorder %s3767_s4, 5 }
  0x4a   : > { %s3822_s15 = scalar_select %p130_p7, %s3548_s14, %s132_s21  }
  0x4b   : > { %p3824_p8 = por %p143_p5, %p142_p11  ;;  %p148_p10 = scmp.ne.s32.totalorder %s3544_s13, %s3540_s12 }
  0x4c   : > { %4720 = sst [smem:[#allocation24_spill]] %s3822_s15  ;;  %p149_p2 = scmp.eq.s32.totalorder %s2796_s6, 5 }
  0x4d   : > { %s4721_s28 = scalar_select %p3824_p8, 1, 0 }
  0x4e   : > { %s169_s1 = sand.u32 1, %s3572_s20   ;;  %p3831_p13 = por %p149_p2, %p148_p10 }
  0x4f   : > { %s2799_s5 = sshll.u32 %s169_s1, 10  ;;  %s2822_s9 = sshll.u32 %s3588_s24, 14 }
  0x50   : > { %s4722_s8 = scalar_select %p3831_p13, 1, 0 }
  0x51   : > { %s173_s18 = scalar_lea.vmem [#allocation3], %s2799_s5  ;;  %s3839_s21 = scalar_lea.hbm %s4675_s0, %s2822_s9 }
  0x52   : > { %s183_s3 = sshll.u32 %s173_s18, 4  ;;  %p4723_p3 = scmp.lt.s32.totalorder %s3592_s25, 6  ;;  %s3841_s3 = int_to_ptr.vmem [resolvable:$true] %s183_s3 }
  0x53   : > { %s4725_s24 = sand.u32 1, %s3560_s17   ;;  %s2824_s22 = sshll.u32 %s3584_s23, 6 }
  0x54   : > { %p3847_p7 = pnand %p4723_p3, %p3788_p12  ;;  %s3853_s5 = sshll.u32 %s4725_s24, 2 }
  0x55   : > { %s3859_s18 = scalar_lea.hbm %s4677_s2, %s2824_s22  ;;  %s3861_s20 = scalar_lea.sflag [#allocation4], %s169_s1 }
  0x56   : > { %s3382_s15 = scalar_lea.hbm %s3839_s21, 16384  ;;  %p3384_p12 = pneg %p3847_p7 }
  0x57   : > { %p3383_p11 = scmp.ne.s32.totalorder %s3839_s21, %s3382_s15  ;;  %s3387_s24 = scalar_lea.hbm %s4675_s0, 32768 }
  0x58   : > { %p3388_p2 = scmp.lt.u32.totalorder %s3839_s21, %s4675_s0  ;;  %p3389_p3 = scmp.lt.u32.totalorder %s3387_s24, %s3382_s15 }
  0x59   : > { %p3385_p5 = pnand %p3384_p12, %p3383_p11  ;;  %p3391_p13 = scmp.lt.u32.totalorder %s3382_s15, %s3839_s21 }
  0x5a   : > { %p3390_p9 = por %p3389_p3, %p3388_p2 }
  0x5b   : > { %p3386_p10 = pneg %p3385_p5 }
  0x5c   : > { %p3392_p8 = por %p3391_p13, %p3390_p9 }
  0x5e   : > { %p3393_p0 = pnand %p3392_p8, %p3386_p10 }
  0x60   : > { %3396 = shalt.err (!%p3393_p0)
}
  0x61   : > { %s3397_s1 = scalar_lea.vmem %s3841_s3, 16384  ;;  %s3598_s17 = smov [#allocation3]  }
  0x62   : > { %p3398_p11 = scmp.ne.s32.totalorder %s3841_s3, %s3397_s1  ;;  %s3402_s22 = sshll.u32 %s3598_s17, 4  ;;  %s3403_s22 = int_to_ptr.vmem [resolvable:$false] %s3402_s22 }
  0x63   : > { %s3404_s14 = scalar_lea.vmem %s3403_s22, 32768  ;;  %p3405_p4 = scmp.lt.s32.totalorder %s3841_s3, %s3403_s22 }
  0x64   : > { %p3400_p5 = pnand %p3398_p11, %p3384_p12  ;;  %p3406_p2 = scmp.lt.s32.totalorder %s3404_s14, %s3397_s1 }
  0x66   : > { %p3401_p1 = pneg %p3400_p5  ;;  %p3407_p3 = por %p3406_p2, %p3405_p4 }
  0x68   : > { %p3408_p9 = pnand %p3407_p3, %p3401_p1 }
  0x6a   : > { %3411 = shalt.err (!%p3408_p9)
}
  0x6b   : > { %s4726_s23 = smov 32   ;;  %s4727_s15 = smov 512  }
  0x6c   : > { %3221 = dma.hbm_to_vmem [thread:$0]  (!%p3847_p7), %s3839_s21, 16384, %s3841_s3, %s3861_s20, %s4727_s15, %s4727_s15, %s4726_s23  }
  0x6d   : > { %s221_s26 = scalar_lea.vmem [#allocation8], %s3853_s5  ;;  %s3412_s10 = scalar_lea.hbm %s3859_s18, 64 }
  0x6e   : > { %s229_s9 = sshll.u32 %s221_s26, 4  ;;  %p3413_p4 = scmp.ne.s32.totalorder %s3859_s18, %s3412_s10  ;;  %s230_s9 = int_to_ptr.vmem [resolvable:$true] %s229_s9 }
  0x6f   : > { %p4728_p1 = pneg %p3722_p6  ;;  %s3417_s1 = scalar_lea.hbm %s4677_s2, 192 }
  0x70   : > { %p3418_p13 = scmp.lt.u32.totalorder %s3859_s18, %s4677_s2  ;;  %p3419_p12 = scmp.lt.u32.totalorder %s3417_s1, %s3412_s10 }
  0x71   : > { %p3415_p0 = pnand %p3413_p4, %p4728_p1  ;;  %p3421_p7 = scmp.lt.u32.totalorder %s3412_s10, %s3859_s18 }
  0x72   : > { %p3420_p10 = por %p3419_p12, %p3418_p13 }
  0x73   : > { %p3416_p8 = pneg %p3415_p0 }
  0x74   : > { %p3422_p11 = por %p3421_p7, %p3420_p10 }
  0x76   : > { %p3423_p5 = pnand %p3422_p11, %p3416_p8 }
  0x78   : > { %3426 = shalt.err (!%p3423_p5)
}
  0x79   : > { %s3427_s3 = scalar_lea.vmem %s230_s9, 64  ;;  %p4729_p3 = pmov %p4728_p1 }
  0x7a   : > { %p3428_p2 = scmp.ne.s32.totalorder %s230_s9, %s3427_s3  ;;  %s3599_s20 = smov [#allocation8]  }
  0x7b   : > { %s3432_s21 = sshll.u32 %s3599_s20, 4  ;;  %s3433_s21 = int_to_ptr.vmem [resolvable:$false] %s3432_s21 }
  0x7c   : > { %p3430_p9 = pnand %p3428_p2, %p4729_p3  ;;  %s3434_s5 = scalar_lea.vmem %s3433_s21, 128 }
  0x7d   : > { %p3435_p1 = scmp.lt.s32.totalorder %s230_s9, %s3433_s21  ;;  %p3436_p0 = scmp.lt.s32.totalorder %s3434_s5, %s3427_s3 }
  0x7e   : > { %p3431_p4 = pneg %p3430_p9 }
  0x7f   : > { %p3437_p12 = por %p3436_p0, %p3435_p1 }
  0x81   : > { %p3438_p13 = pnand %p3437_p12, %p3431_p4 }
  0x83   : > { %3441 = shalt.err (!%p3438_p13)
}
  0x84   : > { %3227 = dma.hbm_to_vmem [thread:$0]  (!%p3722_p6), %s3859_s18, 64, %s230_s9, %s3729_s30  }
  0x85   : > { %p4730_p8 = scmp.ne.s32.totalorder %s4709_s29, 0 }
  0x86   : > { %s240_s14 = sand.u32 (!%p4730_p8), 1, %s3568_s19   ;;  %p4731_p10 = scmp.ne.s32.totalorder (!%p4730_p8), %s4714_s27, 0 }
  0x87   : > { %238 = sbr.rel (%p4730_p8) target bundleno = 700 (0x2bc), region = 32  ;;  %s2810_s23 = sshll.u32 (!%p4730_p8), %s240_s14, 10 }
  0x88   : > { %s241_s15 = scalar_lea.sflag (!%p4730_p8), [#allocation4], %s240_s14  ;;  %s3916_s26 = scalar_lea.vmem (!%p4730_p8), [#allocation3], %s2810_s23 }
  0x8e   : > { %3527 = dma.done.wait (%p4731_p10), %s241_s15, 16384  }
  0x8f   : > { %3529 = vsyncadd (%p4731_p10), %s241_s15, 4294950912  ;;  %s249_s30 = sand.u32 1, %s3767_s4   ;;  %s251_s11 = sand.u32 1, %s3556_s16  }
  0x90   : > { %s2811_s29 = sshll.u32 %s251_s11, 11  ;;  %s250_s18 = scalar_lea.sflag [#allocation7], %s249_s30 }
  0x91   : > { %s3926_s9 = scalar_lea.vmem [#allocation6], %s2811_s29  ;;  %p4732_p6 = scmp.ne.s32.totalorder %s4716_s7, 0 }
  0x93   : > { %3531 = dma.done.wait (%p4732_p6), %s250_s18, 32832  }
  0x94   : > { %3533 = vsyncadd (%p4732_p6), %s250_s18, 4294934464  ;;  %v691_v0 = vld [vmem:[%s3926_s9 + $0x8] sm:$0xff]  ;;  %v693_v2 = vld [vmem:[%s3926_s9 + $0x18] sm:$0xff]  ;;  %s2812_s7 = sshll.u32 %s251_s11, 2  ;;  %s292_s4 = sand.u32 1, %s3544_s13  }
  0x95   : > { %v695_v1 = vld [vmem:[%s3926_s9 + $0x28] sm:$0xff]  ;;  %v697_v4 = vld [vmem:[%s3926_s9 + $0x38] sm:$0xff]  ;;  %v690_v5 = vld [vmem:[%s3926_s9] sm:$0xff]  ;;  %s262_s27 = scalar_lea.vmem [#allocation8], %s2812_s7  ;;  %s2813_s10 = sshll.u32 %s292_s4, 10 }
  0x96   : > { %v2825_v3 = vpack.c.bf16 %v695_v1, %v691_v0  ;;  %v694_v6 = vld [vmem:[%s3926_s9 + $0x20] sm:$0xff]  ;;  %v2953_v7 = vpack.c.bf16 %v697_v4, %v693_v2  ;;  %v692_v9 = vld [vmem:[%s3926_s9 + $0x10] sm:$0xff]  ;;  %v699_v11 = vld [vmem:[%s3926_s9 + $0x48] sm:$0xff]  ;;  %s4332_s6 = scalar_lea.vmem [#allocation9], %s2813_s10  ;;  %s4733_s24 = sld [smem:[#allocation17_spill]] }
  0x97   : > { %v2827_v8 = vpack.c.bf16 %v694_v6, %v690_v5  ;;  %v696_v10 = vld [vmem:[%s3926_s9 + $0x30] sm:$0xff]  ;;  %v703_v13 = vld [vmem:[%s3926_s9 + $0x68] sm:$0xff]  ;;  %v701_v14 = vld [vmem:[%s3926_s9 + $0x58] sm:$0xff]  ;;  %s4734_s1 = sld [smem:[#allocation16_spill]]  ;;  %s2656_s21 = sshll.u32 %s4332_s6, 4  ;;  %s4590_s21 = int_to_ptr.vmem [resolvable:$true] %s2656_s21 }
  0x98   : > { %2826 = vmatprep.subr.bf16.mxu0 %v2825_v3  ;;  %v2955_v12 = vpack.c.bf16 %v696_v10, %v692_v9  ;;  %v705_v15 = vld [vmem:[%s3926_s9 + $0x78] sm:$0xff]  ;;  %2954 = vmatprep.subr.bf16.mxu1 %v2953_v7  ;;  %v2829_v16 = vpack.c.bf16 %v703_v13, %v699_v11  ;;  %v698_v18 = vld [vmem:[%s3926_s9 + $0x40] sm:$0xff]  ;;  %v700_v20 = vld [vmem:[%s3926_s9 + $0x50] sm:$0xff]  ;;  %s4735_s23 = sld [smem:[#allocation26_spill]]  ;;  %s4599_s30 = scalar_lea.sflag [#allocation5], %s292_s4 }
  0x99   : > { %2828 = vmatpush1.bf16.msra.mxu0 %v2827_v8  ;;  %v2957_v17 = vpack.c.bf16 %v705_v15, %v701_v14  ;;  %v702_v19 = vld [vmem:[%s3926_s9 + $0x60] sm:$0xff]  ;;  %v704_v22 = vld [vmem:[%s3926_s9 + $0x70] sm:$0xff]  ;;  %v707_v23 = vld [vmem:[%s3926_s9 + $0x88] sm:$0xff]  ;;  %s3442_s11 = scalar_lea.vmem %s4590_s21, 16384  ;;  %p4737_p11 = scmp.ne.s32.totalorder %s4721_s28, 0 }
  0x9a   : > { %2956 = vmatpush1.bf16.msra.mxu1 %v2955_v12  ;;  %v2831_v21 = vpack.c.bf16 %v702_v19, %v698_v18  ;;  %v711_v24 = vld [vmem:[%s3926_s9 + $0xa8] sm:$0xff]  ;;  %2830 = vmatprep.subr.bf16.mxu0 %v2829_v16  ;;  %v2959_v25 = vpack.c.bf16 %v704_v22, %v700_v20  ;;  %v709_v27 = vld [vmem:[%s3926_s9 + $0x98] sm:$0xff]  ;;  %v706_v29 = vld [vmem:[%s3926_s9 + $0x80] sm:$0xff]  ;;  %p3443_p7 = scmp.ne.s32.totalorder %s4590_s21, %s3442_s11  ;;  %s3600_s29 = smov [#allocation9]  }
  0x9b   : > { %2958 = vmatprep.subr.bf16.mxu1 %v2957_v17  ;;  %v2833_v26 = vpack.c.bf16 %v711_v24, %v707_v23  ;;  %v713_v28 = vld [vmem:[%s3926_s9 + $0xb8] sm:$0xff]  ;;  %v710_v31 = vld [vmem:[%s3926_s9 + $0xa0] sm:$0xff]  ;;  %v708_v32 = vld [vmem:[%s3926_s9 + $0x90] sm:$0xff]  ;;  %s3446_s18 = sshll.u32 %s3600_s29, 4  ;;  %s3447_s18 = int_to_ptr.vmem [resolvable:$false] %s3446_s18 }
  0x9c   : > { %v2961_v30 = vpack.c.bf16 %v713_v28, %v709_v27  ;;  %v712_v33 = vld [vmem:[%s3926_s9 + $0xb0] sm:$0xff]  ;;  %v2835_v34 = vpack.c.bf16 %v710_v31, %v706_v29  ;;  %v715_v35 = vld [vmem:[%s3926_s9 + $0xc8] sm:$0xff]  ;;  %v717_v37 = vld [vmem:[%s3926_s9 + $0xd8] sm:$0xff]  ;;  %s3209_s17 = smul.u32 384, %s4733_s24  ;;  %p3444_p5 = pnand %p3443_p7, %p4737_p11 }
  0x9d   : > { %2832 = vmatpush1.bf16.msra.mxu0 %v2831_v21  ;;  %v719_v36 = vld [vmem:[%s3926_s9 + $0xe8] sm:$0xff]  ;;  %v2963_v38 = vpack.c.bf16 %v712_v33, %v708_v32  ;;  %v721_v40 = vld [vmem:[%s3926_s9 + $0xf8] sm:$0xff]  ;;  %v714_v41 = vld [vmem:[%s3926_s9 + $0xc0] sm:$0xff]  ;;  %s2816_s22 = sshll.u32 %s4734_s1, 2  ;;  %p3449_p3 = scmp.lt.s32.totalorder %s4590_s21, %s3447_s18 }
  0x9e   : > { %2960 = vmatpush1.bf16.msra.mxu1 %v2959_v25  ;;  %2834 = vmatprep.subr.bf16.mxu0 %v2833_v26  ;;  %v2837_v39 = vpack.c.bf16 %v719_v36, %v715_v35  ;;  %v718_v42 = vld [vmem:[%s3926_s9 + $0xe0] sm:$0xff]  ;;  %v2965_v43 = vpack.c.bf16 %v721_v40, %v717_v37  ;;  %v716_v44 = vld [vmem:[%s3926_s9 + $0xd0] sm:$0xff]  ;;  %v723_v46 = vld [vmem:[%s3926_s9 + $0x108] sm:$0xff]  ;;  %s2653_s3 = sadd.s32 %s3209_s17, %s2816_s22  ;;  %p3445_p2 = pneg %p3444_p5 }
  0x9f   : > { %2962 = vmatprep.subr.bf16.mxu1 %v2961_v30  ;;  %v720_v45 = vld [vmem:[%s3926_s9 + $0xf0] sm:$0xff]  ;;  %v727_v47 = vld [vmem:[%s3926_s9 + $0x128] sm:$0xff]  ;;  %v725_v48 = vld [vmem:[%s3926_s9 + $0x118] sm:$0xff]  ;;  %v2839_v50 = vpack.c.bf16 %v718_v42, %v714_v41  ;;  %s2818_s20 = sshll.u32 %s2653_s3, 7 }
  0xa0   : > { %v729_v49 = vld [vmem:[%s3926_s9 + $0x138] sm:$0xff]  ;;  %v2967_v51 = vpack.c.bf16 %v720_v45, %v716_v44  ;;  %v2841_v52 = vpack.c.bf16 %v727_v47, %v723_v46  ;;  %v722_v53 = vld [vmem:[%s3926_s9 + $0x100] sm:$0xff]  ;;  %v724_v55 = vld [vmem:[%s3926_s9 + $0x110] sm:$0xff]  ;;  %s4586_s15 = scalar_lea.hbm %s4735_s23, %s2818_s20 }
  0xa1   : > { %2836 = vmatpush1.bf16.msra.mxu0 %v2835_v34  ;;  %v726_v54 = vld [vmem:[%s3926_s9 + $0x120] sm:$0xff]  ;;  %v2969_v56 = vpack.c.bf16 %v729_v49, %v725_v48  ;;  %v728_v57 = vld [vmem:[%s3926_s9 + $0x130] sm:$0xff]  ;;  %v731_v58 = vld [vmem:[%s3926_s9 + $0x148] sm:$0xff] }
  0xa2   : > { %2964 = vmatpush1.bf16.msra.mxu1 %v2963_v38  ;;  %2838 = vmatprep.subr.bf16.mxu0 %v2837_v39  ;;  %v735_v59 = vld [vmem:[%s3926_s9 + $0x168] sm:$0xff]  ;;  %v733_v60 = vld [vmem:[%s3926_s9 + $0x158] sm:$0xff]  ;;  %v2843_v62 = vpack.c.bf16 %v726_v54, %v722_v53  ;;  %v2971_v63 = vpack.c.bf16 %v728_v57, %v724_v55  ;;  %v730_v1 = vld [vmem:[%s3926_s9 + $0x140] sm:$0xff] }
  0xa3   : > { %2966 = vmatprep.subr.bf16.mxu1 %v2965_v43  ;;  %v737_v61 = vld [vmem:[%s3926_s9 + $0x178] sm:$0xff]  ;;  %v2845_v0 = vpack.c.bf16 %v735_v59, %v731_v58  ;;  %v734_v2 = vld [vmem:[%s3926_s9 + $0x160] sm:$0xff]  ;;  %v732_v3 = vld [vmem:[%s3926_s9 + $0x150] sm:$0xff] }
  0xa4   : > { %v2973_v4 = vpack.c.bf16 %v737_v61, %v733_v60  ;;  %v736_v5 = vld [vmem:[%s3926_s9 + $0x170] sm:$0xff]  ;;  %v739_v6 = vld [vmem:[%s3926_s9 + $0x188] sm:$0xff]  ;;  %v741_v8 = vld [vmem:[%s3926_s9 + $0x198] sm:$0xff]  ;;  %v2847_v10 = vpack.c.bf16 %v734_v2, %v730_v1 }
  0xa5   : > { %2840 = vmatpush1.bf16.msra.mxu0 %v2839_v50  ;;  %v743_v7 = vld [vmem:[%s3926_s9 + $0x1a8] sm:$0xff]  ;;  %v745_v9 = vld [vmem:[%s3926_s9 + $0x1b8] sm:$0xff]  ;;  %v2975_v11 = vpack.c.bf16 %v736_v5, %v732_v3  ;;  %v738_v13 = vld [vmem:[%s3926_s9 + $0x180] sm:$0xff] }
  0xa6   : > { %2968 = vmatpush1.bf16.msra.mxu1 %v2967_v51  ;;  %2842 = vmatprep.subr.bf16.mxu0 %v2841_v52  ;;  %v2849_v12 = vpack.c.bf16 %v743_v7, %v739_v6  ;;  %v742_v14 = vld [vmem:[%s3926_s9 + $0x1a0] sm:$0xff]  ;;  %v740_v15 = vld [vmem:[%s3926_s9 + $0x190] sm:$0xff]  ;;  %v2977_v16 = vpack.c.bf16 %v745_v9, %v741_v8  ;;  %v747_v18 = vld [vmem:[%s3926_s9 + $0x1c8] sm:$0xff] }
  0xa7   : > { %2970 = vmatprep.subr.bf16.mxu1 %v2969_v56  ;;  %v744_v17 = vld [vmem:[%s3926_s9 + $0x1b0] sm:$0xff]  ;;  %v751_v19 = vld [vmem:[%s3926_s9 + $0x1e8] sm:$0xff]  ;;  %v749_v20 = vld [vmem:[%s3926_s9 + $0x1d8] sm:$0xff]  ;;  %v2851_v22 = vpack.c.bf16 %v742_v14, %v738_v13 }
  0xa8   : > { %v753_v21 = vld [vmem:[%s3926_s9 + $0x1f8] sm:$0xff]  ;;  %v2979_v23 = vpack.c.bf16 %v744_v17, %v740_v15  ;;  %v2853_v24 = vpack.c.bf16 %v751_v19, %v747_v18  ;;  %v746_v25 = vld [vmem:[%s3926_s9 + $0x1c0] sm:$0xff]  ;;  %v748_v27 = vld [vmem:[%s3926_s9 + $0x1d0] sm:$0xff] }
  0xa9   : > { %2844 = vmatpush1.bf16.msra.mxu0 %v2843_v62  ;;  %v750_v26 = vld [vmem:[%s3926_s9 + $0x1e0] sm:$0xff]  ;;  %v2981_v28 = vpack.c.bf16 %v753_v21, %v749_v20  ;;  %v752_v29 = vld [vmem:[%s3926_s9 + $0x1f0] sm:$0xff]  ;;  %v755_v30 = vld [vmem:[%s3926_s9 + $0x208] sm:$0xff] }
  0xaa   : > { %2972 = vmatpush1.bf16.msra.mxu1 %v2971_v63  ;;  %2846 = vmatprep.subr.bf16.mxu0 %v2845_v0  ;;  %v759_v31 = vld [vmem:[%s3926_s9 + $0x228] sm:$0xff]  ;;  %v757_v32 = vld [vmem:[%s3926_s9 + $0x218] sm:$0xff]  ;;  %v2855_v34 = vpack.c.bf16 %v750_v26, %v746_v25  ;;  %v2983_v35 = vpack.c.bf16 %v752_v29, %v748_v27  ;;  %v754_v37 = vld [vmem:[%s3926_s9 + $0x200] sm:$0xff] }
  0xab   : > { %2974 = vmatprep.subr.bf16.mxu1 %v2973_v4  ;;  %v761_v33 = vld [vmem:[%s3926_s9 + $0x238] sm:$0xff]  ;;  %v2857_v36 = vpack.c.bf16 %v759_v31, %v755_v30  ;;  %v758_v38 = vld [vmem:[%s3926_s9 + $0x220] sm:$0xff]  ;;  %v756_v39 = vld [vmem:[%s3926_s9 + $0x210] sm:$0xff] }
  0xac   : > { %v2985_v40 = vpack.c.bf16 %v761_v33, %v757_v32  ;;  %v760_v41 = vld [vmem:[%s3926_s9 + $0x230] sm:$0xff]  ;;  %v763_v42 = vld [vmem:[%s3926_s9 + $0x248] sm:$0xff]  ;;  %v765_v44 = vld [vmem:[%s3926_s9 + $0x258] sm:$0xff]  ;;  %v2859_v46 = vpack.c.bf16 %v758_v38, %v754_v37 }
  0xad   : > { %2848 = vmatpush1.bf16.msra.mxu0 %v2847_v10  ;;  %v767_v43 = vld [vmem:[%s3926_s9 + $0x268] sm:$0xff]  ;;  %v769_v45 = vld [vmem:[%s3926_s9 + $0x278] sm:$0xff]  ;;  %v2987_v47 = vpack.c.bf16 %v760_v41, %v756_v39  ;;  %v762_v49 = vld [vmem:[%s3926_s9 + $0x240] sm:$0xff] }
  0xae   : > { %2976 = vmatpush1.bf16.msra.mxu1 %v2975_v11  ;;  %2850 = vmatprep.subr.bf16.mxu0 %v2849_v12  ;;  %v2861_v48 = vpack.c.bf16 %v767_v43, %v763_v42  ;;  %v766_v50 = vld [vmem:[%s3926_s9 + $0x260] sm:$0xff]  ;;  %v764_v51 = vld [vmem:[%s3926_s9 + $0x250] sm:$0xff]  ;;  %v2989_v52 = vpack.c.bf16 %v769_v45, %v765_v44  ;;  %v771_v54 = vld [vmem:[%s3926_s9 + $0x288] sm:$0xff] }
  0xaf   : > { %2978 = vmatprep.subr.bf16.mxu1 %v2977_v16  ;;  %v768_v53 = vld [vmem:[%s3926_s9 + $0x270] sm:$0xff]  ;;  %v775_v55 = vld [vmem:[%s3926_s9 + $0x2a8] sm:$0xff]  ;;  %v773_v56 = vld [vmem:[%s3926_s9 + $0x298] sm:$0xff]  ;;  %v2863_v58 = vpack.c.bf16 %v766_v50, %v762_v49 }
  0xb0   : > { %v777_v57 = vld [vmem:[%s3926_s9 + $0x2b8] sm:$0xff]  ;;  %v2991_v59 = vpack.c.bf16 %v768_v53, %v764_v51  ;;  %v2865_v60 = vpack.c.bf16 %v775_v55, %v771_v54  ;;  %v770_v61 = vld [vmem:[%s3926_s9 + $0x280] sm:$0xff]  ;;  %v772_v63 = vld [vmem:[%s3926_s9 + $0x290] sm:$0xff] }
  0xb1   : > { %2852 = vmatpush1.bf16.msra.mxu0 %v2851_v22  ;;  %v774_v62 = vld [vmem:[%s3926_s9 + $0x2a0] sm:$0xff]  ;;  %v2993_v0 = vpack.c.bf16 %v777_v57, %v773_v56  ;;  %v776_v1 = vld [vmem:[%s3926_s9 + $0x2b0] sm:$0xff]  ;;  %v779_v2 = vld [vmem:[%s3926_s9 + $0x2c8] sm:$0xff] }
  0xb2   : > { %2980 = vmatpush1.bf16.msra.mxu1 %v2979_v23  ;;  %2854 = vmatprep.subr.bf16.mxu0 %v2853_v24  ;;  %v783_v3 = vld [vmem:[%s3926_s9 + $0x2e8] sm:$0xff]  ;;  %v781_v4 = vld [vmem:[%s3926_s9 + $0x2d8] sm:$0xff]  ;;  %v2867_v6 = vpack.c.bf16 %v774_v62, %v770_v61  ;;  %v778_v7 = vld [vmem:[%s3926_s9 + $0x2c0] sm:$0xff]  ;;  %v2995_v8 = vpack.c.bf16 %v776_v1, %v772_v63 }
  0xb3   : > { %2982 = vmatprep.subr.bf16.mxu1 %v2981_v28  ;;  %v785_v5 = vld [vmem:[%s3926_s9 + $0x2f8] sm:$0xff]  ;;  %v2869_v9 = vpack.c.bf16 %v783_v3, %v779_v2  ;;  %v782_v10 = vld [vmem:[%s3926_s9 + $0x2e0] sm:$0xff]  ;;  %v780_v11 = vld [vmem:[%s3926_s9 + $0x2d0] sm:$0xff] }
  0xb4   : > { %v784_v12 = vld [vmem:[%s3926_s9 + $0x2f0] sm:$0xff]  ;;  %v2997_v13 = vpack.c.bf16 %v785_v5, %v781_v4  ;;  %v787_v14 = vld [vmem:[%s3926_s9 + $0x308] sm:$0xff]  ;;  %v789_v17 = vld [vmem:[%s3926_s9 + $0x318] sm:$0xff]  ;;  %v2871_v19 = vpack.c.bf16 %v782_v10, %v778_v7 }
  0xb5   : > { %2856 = vmatpush1.bf16.msra.mxu0 %v2855_v34  ;;  %v791_v15 = vld [vmem:[%s3926_s9 + $0x328] sm:$0xff]  ;;  %v793_v18 = vld [vmem:[%s3926_s9 + $0x338] sm:$0xff]  ;;  %v2999_v20 = vpack.c.bf16 %v784_v12, %v780_v11  ;;  %v786_v22 = vld [vmem:[%s3926_s9 + $0x300] sm:$0xff] }
  0xb6   : > { %2984 = vmatpush1.bf16.msra.mxu1 %v2983_v35  ;;  %2858 = vmatprep.subr.bf16.mxu0 %v2857_v36  ;;  %v563_v16 = vld [vmem:[%s3916_s26 + $0x8] sm:$0xff]  ;;  %v2873_v21 = vpack.c.bf16 %v791_v15, %v787_v14  ;;  %v790_v23 = vld [vmem:[%s3926_s9 + $0x320] sm:$0xff]  ;;  %v788_v24 = vld [vmem:[%s3926_s9 + $0x310] sm:$0xff]  ;;  %v3001_v25 = vpack.c.bf16 %v793_v18, %v789_v17 }
  0xb7   : > { %2986 = vmatprep.subr.bf16.mxu1 %v2985_v40  ;;  %1010 = vmatprep.mubr.f32.mxu0 %v563_v16  ;;  %v792_v26 = vld [vmem:[%s3926_s9 + $0x330] sm:$0xff]  ;;  %v795_v27 = vld [vmem:[%s3926_s9 + $0x348] sm:$0xff]  ;;  %v797_v29 = vld [vmem:[%s3926_s9 + $0x358] sm:$0xff]  ;;  %v2875_v31 = vpack.c.bf16 %v790_v23, %v786_v22 }
  0xb8   : > { %1524 = vmatprep.mubr.f32.mxu1 %v563_v16  ;;  %v799_v28 = vld [vmem:[%s3926_s9 + $0x368] sm:$0xff]  ;;  %v801_v30 = vld [vmem:[%s3926_s9 + $0x378] sm:$0xff]  ;;  %v3003_v32 = vpack.c.bf16 %v792_v26, %v788_v24  ;;  %v794_v34 = vld [vmem:[%s3926_s9 + $0x340] sm:$0xff] }
  0xb9   : > { %2860 = vmatpush1.bf16.msra.mxu0 %v2859_v46  ;;  %v2877_v33 = vpack.c.bf16 %v799_v28, %v795_v27  ;;  %v798_v35 = vld [vmem:[%s3926_s9 + $0x360] sm:$0xff]  ;;  %v796_v36 = vld [vmem:[%s3926_s9 + $0x350] sm:$0xff]  ;;  %v3005_v37 = vpack.c.bf16 %v801_v30, %v797_v29  ;;  %v803_v39 = vld [vmem:[%s3926_s9 + $0x388] sm:$0xff] }
  0xba   : > { %2988 = vmatpush1.bf16.msra.mxu1 %v2987_v47  ;;  %2862 = vmatprep.subr.bf16.mxu0 %v2861_v48  ;;  %v800_v38 = vld [vmem:[%s3926_s9 + $0x370] sm:$0xff]  ;;  %v807_v40 = vld [vmem:[%s3926_s9 + $0x3a8] sm:$0xff]  ;;  %v805_v41 = vld [vmem:[%s3926_s9 + $0x398] sm:$0xff]  ;;  %v2879_v43 = vpack.c.bf16 %v798_v35, %v794_v34 }
  0xbb   : > { %2990 = vmatprep.subr.bf16.mxu1 %v2989_v52  ;;  %v809_v42 = vld [vmem:[%s3926_s9 + $0x3b8] sm:$0xff]  ;;  %v3007_v44 = vpack.c.bf16 %v800_v38, %v796_v36  ;;  %v2881_v45 = vpack.c.bf16 %v807_v40, %v803_v39  ;;  %v802_v46 = vld [vmem:[%s3926_s9 + $0x380] sm:$0xff]  ;;  %v804_v48 = vld [vmem:[%s3926_s9 + $0x390] sm:$0xff] }
  0xbc   : > { %v806_v47 = vld [vmem:[%s3926_s9 + $0x3a0] sm:$0xff]  ;;  %v3009_v49 = vpack.c.bf16 %v809_v42, %v805_v41  ;;  %v808_v50 = vld [vmem:[%s3926_s9 + $0x3b0] sm:$0xff]  ;;  %v811_v51 = vld [vmem:[%s3926_s9 + $0x3c8] sm:$0xff] }
  0xbd   : > { %2864 = vmatpush1.bf16.msra.mxu0 %v2863_v58  ;;  %v815_v52 = vld [vmem:[%s3926_s9 + $0x3e8] sm:$0xff]  ;;  %v813_v53 = vld [vmem:[%s3926_s9 + $0x3d8] sm:$0xff]  ;;  %v2883_v55 = vpack.c.bf16 %v806_v47, %v802_v46  ;;  %v3011_v56 = vpack.c.bf16 %v808_v50, %v804_v48  ;;  %v810_v58 = vld [vmem:[%s3926_s9 + $0x3c0] sm:$0xff] }
  0xbe   : > { %2992 = vmatpush1.bf16.msra.mxu1 %v2991_v59  ;;  %2866 = vmatprep.subr.bf16.mxu0 %v2865_v60  ;;  %v817_v54 = vld [vmem:[%s3926_s9 + $0x3f8] sm:$0xff]  ;;  %v2885_v57 = vpack.c.bf16 %v815_v52, %v811_v51  ;;  %v814_v59 = vld [vmem:[%s3926_s9 + $0x3e0] sm:$0xff]  ;;  %v812_v60 = vld [vmem:[%s3926_s9 + $0x3d0] sm:$0xff] }
  0xbf   : > { %2994 = vmatprep.subr.bf16.mxu1 %v2993_v0  ;;  %v3013_v61 = vpack.c.bf16 %v817_v54, %v813_v53  ;;  %v816_v62 = vld [vmem:[%s3926_s9 + $0x3f0] sm:$0xff]  ;;  %v819_v63 = vld [vmem:[%s3926_s9 + $0x408] sm:$0xff]  ;;  %v821_v1 = vld [vmem:[%s3926_s9 + $0x418] sm:$0xff]  ;;  %v2887_v3 = vpack.c.bf16 %v814_v59, %v810_v58 }
  0xc0   : > { %v823_v0 = vld [vmem:[%s3926_s9 + $0x428] sm:$0xff]  ;;  %v825_v2 = vld [vmem:[%s3926_s9 + $0x438] sm:$0xff]  ;;  %v3015_v4 = vpack.c.bf16 %v816_v62, %v812_v60  ;;  %v822_v7 = vld [vmem:[%s3926_s9 + $0x420] sm:$0xff] }
  0xc1   : > { %2868 = vmatpush1.bf16.msra.mxu0 %v2867_v6  ;;  %v2889_v5 = vpack.c.bf16 %v823_v0, %v819_v63  ;;  %v818_v6 = vld [vmem:[%s3926_s9 + $0x400] sm:$0xff]  ;;  %v824_v10 = vld [vmem:[%s3926_s9 + $0x430] sm:$0xff]  ;;  %v827_v11 = vld [vmem:[%s3926_s9 + $0x448] sm:$0xff] }
  0xc2   : > { %2996 = vmatpush1.bf16.msra.mxu1 %v2995_v8  ;;  %2870 = vmatprep.subr.bf16.mxu0 %v2869_v9  ;;  %v3017_v8 = vpack.c.bf16 %v825_v2, %v821_v1  ;;  %v820_v9 = vld [vmem:[%s3926_s9 + $0x410] sm:$0xff]  ;;  %v831_v12 = vld [vmem:[%s3926_s9 + $0x468] sm:$0xff]  ;;  %v2891_v14 = vpack.c.bf16 %v822_v7, %v818_v6  ;;  %v829_v15 = vld [vmem:[%s3926_s9 + $0x458] sm:$0xff] }
  0xc3   : > { %2998 = vmatprep.subr.bf16.mxu1 %v2997_v13  ;;  %v562_v13 = vld [vmem:[%s3916_s26] sm:$0xff]  ;;  %v833_v16 = vld [vmem:[%s3926_s9 + $0x478] sm:$0xff]  ;;  %v3019_v17 = vpack.c.bf16 %v824_v10, %v820_v9  ;;  %v567_v18 = vld [vmem:[%s3916_s26 + $0x28] sm:$0xff] }
  0xc4   : > { %v828_v22 = vld [vmem:[%s3926_s9 + $0x450] sm:$0xff]  ;;  %v3021_v23 = vpack.c.bf16 %v833_v16, %v829_v15  ;;  %v839_v26 = vld [vmem:[%s3926_s9 + $0x4a8] sm:$0xff]  ;;  %v566_v27 = vld [vmem:[%s3916_s26 + $0x20] sm:$0xff] }
  0xc5   : > { %2872 = vmatpush1.bf16.msra.mxu0 %v2871_v19  ;;  %v2893_v19 = vpack.c.bf16 %v831_v12, %v827_v11  ;;  %v832_v24 = vld [vmem:[%s3926_s9 + $0x470] sm:$0xff]  ;;  %v837_v28 = vld [vmem:[%s3926_s9 + $0x498] sm:$0xff]  ;;  %v571_v30 = vld [vmem:[%s3916_s26 + $0x48] sm:$0xff] }
  0xc6   : > { %3000 = vmatpush1.bf16.msra.mxu1 %v2999_v20  ;;  %2874 = vmatprep.subr.bf16.mxu0 %v2873_v21  ;;  %v826_v20 = vld [vmem:[%s3926_s9 + $0x440] sm:$0xff]  ;;  %v841_v29 = vld [vmem:[%s3926_s9 + $0x4b8] sm:$0xff]  ;;  %v836_v36 = vld [vmem:[%s3926_s9 + $0x490] sm:$0xff] }
  0xc7   : > { %3002 = vmatprep.subr.bf16.mxu1 %v3001_v25  ;;  %v830_v21 = vld [vmem:[%s3926_s9 + $0x460] sm:$0xff]  ;;  %v835_v25 = vld [vmem:[%s3926_s9 + $0x488] sm:$0xff]  ;;  %v840_v38 = vld [vmem:[%s3926_s9 + $0x4b0] sm:$0xff] }
  0xc8   : > { %v834_v34 = vld [vmem:[%s3926_s9 + $0x480] sm:$0xff]  ;;  %v843_v39 = vld [vmem:[%s3926_s9 + $0x4c8] sm:$0xff]  ;;  %v845_v42 = vld [vmem:[%s3926_s9 + $0x4d8] sm:$0xff]  ;;  %v3027_v46 = vpack.c.bf16 %v840_v38, %v836_v36 }
  0xc9   : > { %2876 = vmatpush1.bf16.msra.mxu0 %v2875_v31  ;;  %v2895_v31 = vpack.c.bf16 %v830_v21, %v826_v20  ;;  %v838_v35 = vld [vmem:[%s3926_s9 + $0x4a0] sm:$0xff]  ;;  %v847_v40 = vld [vmem:[%s3926_s9 + $0x4e8] sm:$0xff]  ;;  %v844_v50 = vld [vmem:[%s3926_s9 + $0x4d0] sm:$0xff] }
  0xca   : > { %3004 = vmatpush1.bf16.msra.mxu1 %v3003_v32  ;;  %2878 = vmatprep.subr.bf16.mxu0 %v2877_v33  ;;  %v3023_v32 = vpack.c.bf16 %v832_v24, %v828_v22  ;;  %v2897_v33 = vpack.c.bf16 %v839_v26, %v835_v25  ;;  %v570_v41 = vld [vmem:[%s3916_s26 + $0x40] sm:$0xff]  ;;  %v2901_v47 = vpack.c.bf16 %v847_v40, %v843_v39  ;;  %v848_v52 = vld [vmem:[%s3926_s9 + $0x4f0] sm:$0xff]  ;;  %v851_v53 = vld [vmem:[%s3926_s9 + $0x508] sm:$0xff] }
  0xcb   : > { %3006 = vmatprep.subr.bf16.mxu1 %v3005_v37  ;;  %v3025_v37 = vpack.c.bf16 %v841_v29, %v837_v28  ;;  %v842_v48 = vld [vmem:[%s3926_s9 + $0x4c0] sm:$0xff]  ;;  %v855_v54 = vld [vmem:[%s3926_s9 + $0x528] sm:$0xff]  ;;  %v3031_v60 = vpack.c.bf16 %v848_v52, %v844_v50  ;;  %v852_v0 = vld [vmem:[%s3926_s9 + $0x510] sm:$0xff] }
  0xcc   : > { %v579_v58 = vld [vmem:[%s3916_s26 + $0x88] sm:$0xff]  ;;  %v850_v62 = vld [vmem:[%s3926_s9 + $0x500] sm:$0xff]  ;;  %v856_v2 = vld [vmem:[%s3926_s9 + $0x530] sm:$0xff] }
  0xcd   : > { %2880 = vmatpush1.bf16.msra.mxu0 %v2879_v43  ;;  %v849_v43 = vld [vmem:[%s3926_s9 + $0x4f8] sm:$0xff]  ;;  %v854_v63 = vld [vmem:[%s3926_s9 + $0x520] sm:$0xff]  ;;  %v3035_v10 = vpack.c.bf16 %v856_v2, %v852_v0  ;;  %v864_v16 = vld [vmem:[%s3926_s9 + $0x570] sm:$0xff] }
  0xce   : > { %3008 = vmatpush1.bf16.msra.mxu1 %v3007_v44  ;;  %2882 = vmatprep.subr.bf16.mxu0 %v2881_v45  ;;  %v575_v44 = vld [vmem:[%s3916_s26 + $0x68] sm:$0xff]  ;;  %v2899_v45 = vpack.c.bf16 %v838_v35, %v834_v34  ;;  %v3029_v51 = vpack.c.bf16 %v849_v43, %v845_v42  ;;  %v861_v6 = vld [vmem:[%s3926_s9 + $0x558] sm:$0xff]  ;;  %v2907_v9 = vpack.c.bf16 %v854_v63, %v850_v62  ;;  %v858_v12 = vld [vmem:[%s3926_s9 + $0x540] sm:$0xff] }
  0xcf   : > { %3010 = vmatprep.subr.bf16.mxu1 %v3009_v49  ;;  %v846_v49 = vld [vmem:[%s3926_s9 + $0x4e0] sm:$0xff]  ;;  %v865_v7 = vld [vmem:[%s3926_s9 + $0x578] sm:$0xff]  ;;  %v587_v22 = vld [vmem:[%s3916_s26 + $0xc8] sm:$0xff] }
  0xd0   : > { %v2903_v59 = vpack.c.bf16 %v846_v49, %v842_v48  ;;  %v3037_v15 = vpack.c.bf16 %v865_v7, %v861_v6  ;;  %v869_v20 = vld [vmem:[%s3926_s9 + $0x598] sm:$0xff]  ;;  %v866_v26 = vld [vmem:[%s3926_s9 + $0x580] sm:$0xff]  ;;  %v868_v28 = vld [vmem:[%s3926_s9 + $0x590] sm:$0xff] }
  0xd1   : > { %2884 = vmatpush1.bf16.msra.mxu0 %v2883_v55  ;;  %v574_v55 = vld [vmem:[%s3916_s26 + $0x60] sm:$0xff]  ;;  %v873_v21 = vld [vmem:[%s3926_s9 + $0x5b8] sm:$0xff]  ;;  %v591_v36 = vld [vmem:[%s3916_s26 + $0xe8] sm:$0xff] }
  0xd2   : > { %3012 = vmatpush1.bf16.msra.mxu1 %v3011_v56  ;;  %2886 = vmatprep.subr.bf16.mxu0 %v2885_v57  ;;  %v853_v56 = vld [vmem:[%s3926_s9 + $0x518] sm:$0xff]  ;;  %v3041_v29 = vpack.c.bf16 %v873_v21, %v869_v20  ;;  %v874_v40 = vld [vmem:[%s3926_s9 + $0x5c0] sm:$0xff]  ;;  %v876_v42 = vld [vmem:[%s3926_s9 + $0x5d0] sm:$0xff] }
  0xd3   : > { %3014 = vmatprep.subr.bf16.mxu1 %v3013_v61  ;;  %v857_v57 = vld [vmem:[%s3926_s9 + $0x538] sm:$0xff]  ;;  %v2905_v61 = vpack.c.bf16 %v855_v54, %v851_v53  ;;  %v595_v50 = vld [vmem:[%s3916_s26 + $0x108] sm:$0xff]  ;;  %v882_v54 = vld [vmem:[%s3926_s9 + $0x600] sm:$0xff] }
  0xd4   : > { %v3033_v1 = vpack.c.bf16 %v857_v57, %v853_v56  ;;  %v877_v34 = vld [vmem:[%s3926_s9 + $0x5d8] sm:$0xff]  ;;  %v884_v56 = vld [vmem:[%s3926_s9 + $0x610] sm:$0xff]  ;;  %v599_v0 = vld [vmem:[%s3916_s26 + $0x128] sm:$0xff] }
  0xd5   : > { %2888 = vmatpush1.bf16.msra.mxu0 %v2887_v3  ;;  %v859_v3 = vld [vmem:[%s3926_s9 + $0x548] sm:$0xff]  ;;  %v881_v35 = vld [vmem:[%s3926_s9 + $0x5f8] sm:$0xff]  ;;  %v892_v6 = vld [vmem:[%s3926_s9 + $0x650] sm:$0xff] }
  0xd6   : > { %3016 = vmatpush1.bf16.msra.mxu1 %v3015_v4  ;;  %2890 = vmatprep.subr.bf16.mxu0 %v2889_v5  ;;  %v863_v4 = vld [vmem:[%s3926_s9 + $0x568] sm:$0xff]  ;;  %v578_v5 = vld [vmem:[%s3916_s26 + $0x80] sm:$0xff]  ;;  %v3045_v43 = vpack.c.bf16 %v881_v35, %v877_v34  ;;  %v885_v48 = vld [vmem:[%s3926_s9 + $0x618] sm:$0xff] }
  0xd7   : > { %3018 = vmatprep.subr.bf16.mxu1 %v3017_v8  ;;  %v583_v8 = vld [vmem:[%s3916_s26 + $0xa8] sm:$0xff]  ;;  %v2909_v11 = vpack.c.bf16 %v863_v4, %v859_v3  ;;  %v889_v49 = vld [vmem:[%s3926_s9 + $0x638] sm:$0xff]  ;;  %v890_v4 = vld [vmem:[%s3926_s9 + $0x640] sm:$0xff] }
  0xd8   : > { %1011 = vmatmul.mubr.f32.vlgmr.msra.gmra.mrb[0].mxu0 %v562_v13  ;;  %v3049_v57 = vpack.c.bf16 %v889_v49, %v885_v48  ;;  %v893_v62 = vld [vmem:[%s3926_s9 + $0x658] sm:$0xff]  ;;  %v900_v20 = vld [vmem:[%s3926_s9 + $0x690] sm:$0xff] }
  0xd9   : > { %1525 = vmatmul.mubr.f32.vlgmr.msra.gmra.mrb[0].mxu1 %v562_v13  ;;  %2892 = vmatpush1.bf16.msra.mxu0 %v2891_v14  ;;  %v862_v13 = vld [vmem:[%s3926_s9 + $0x560] sm:$0xff]  ;;  %v860_v14 = vld [vmem:[%s3926_s9 + $0x550] sm:$0xff]  ;;  %v897_v63 = vld [vmem:[%s3926_s9 + $0x678] sm:$0xff] }
  0xda   : > { %3020 = vmatpush1.bf16.msra.mxu1 %v3019_v17  ;;  %1016 = vmatprep.mubr.f32.mxu0 %v567_v18  ;;  %v867_v17 = vld [vmem:[%s3926_s9 + $0x588] sm:$0xff]  ;;  %v3039_v24 = vpack.c.bf16 %v864_v16, %v860_v14  ;;  %v3053_v7 = vpack.c.bf16 %v897_v63, %v893_v62  ;;  %v908_v34 = vld [vmem:[%s3926_s9 + $0x6d0] sm:$0xff] }
  0xdb   : > { %1530 = vmatprep.mubr.f32.mxu1 %v567_v18  ;;  %2894 = vmatprep.subr.bf16.mxu0 %v2893_v19  ;;  %v871_v18 = vld [vmem:[%s3926_s9 + $0x5a8] sm:$0xff]  ;;  %v582_v19 = vld [vmem:[%s3916_s26 + $0xa0] sm:$0xff]  ;;  %v916_v48 = vld [vmem:[%s3926_s9 + $0x710] sm:$0xff] }
  0xdc   : > { %1017 = vmatmul.mubr.f32.gmra.mrb[2].mxu0 %v566_v27  ;;  %3022 = vmatprep.subr.bf16.mxu1 %v3021_v23  ;;  %v2911_v23 = vpack.c.bf16 %v862_v13, %v858_v12  ;;  %v2913_v25 = vpack.c.bf16 %v871_v18, %v867_v17  ;;  %v901_v12 = vld [vmem:[%s3926_s9 + $0x698] sm:$0xff]  ;;  %v603_v14 = vld [vmem:[%s3916_s26 + $0x148] sm:$0xff]  ;;  %v898_v18 = vld [vmem:[%s3926_s9 + $0x680] sm:$0xff] }
  0xdd   : > { %1531 = vmatmul.mubr.f32.gmra.mrb[2].mxu1 %v566_v27  ;;  %1022 = vmatprep.mubr.f32.mxu0 %v571_v30  ;;  %v870_v27 = vld [vmem:[%s3926_s9 + $0x5a0] sm:$0xff]  ;;  %v905_v13 = vld [vmem:[%s3926_s9 + $0x6b8] sm:$0xff]  ;;  %v924_v62 = vld [vmem:[%s3926_s9 + $0x750] sm:$0xff] }
  0xde   : > { %1536 = vmatprep.mubr.f32.mxu1 %v571_v30  ;;  %2896 = vmatpush1.bf16.msra.mxu0 %v2895_v31  ;;  %v872_v30 = vld [vmem:[%s3926_s9 + $0x5b0] sm:$0xff]  ;;  %v875_v31 = vld [vmem:[%s3926_s9 + $0x5c8] sm:$0xff]  ;;  %v3057_v21 = vpack.c.bf16 %v905_v13, %v901_v12 }
  0xdf   : > { %3024 = vmatpush1.bf16.msra.mxu1 %v3023_v32  ;;  %2898 = vmatprep.subr.bf16.mxu0 %v2897_v33  ;;  %v879_v32 = vld [vmem:[%s3926_s9 + $0x5e8] sm:$0xff]  ;;  %v586_v33 = vld [vmem:[%s3916_s26 + $0xc0] sm:$0xff]  ;;  %v3043_v38 = vpack.c.bf16 %v872_v30, %v868_v28  ;;  %v932_v12 = vld [vmem:[%s3926_s9 + $0x790] sm:$0xff] }
  0xe0   : > { %1023 = vmatmul.mubr.f32.gmra.mrb[4].mxu0 %v570_v41  ;;  %3026 = vmatprep.subr.bf16.mxu1 %v3025_v37  ;;  %v2915_v37 = vpack.c.bf16 %v870_v27, %v866_v26  ;;  %v2917_v39 = vpack.c.bf16 %v879_v32, %v875_v31  ;;  %v909_v26 = vld [vmem:[%s3926_s9 + $0x6d8] sm:$0xff]  ;;  %v607_v28 = vld [vmem:[%s3916_s26 + $0x168] sm:$0xff]  ;;  %v906_v32 = vld [vmem:[%s3926_s9 + $0x6c0] sm:$0xff] }
  0xe1   : > { %1537 = vmatmul.mubr.f32.gmra.mrb[4].mxu1 %v570_v41  ;;  %1028 = vmatprep.mubr.f32.mxu0 %v575_v44  ;;  %v878_v41 = vld [vmem:[%s3926_s9 + $0x5e0] sm:$0xff]  ;;  %v913_v27 = vld [vmem:[%s3926_s9 + $0x6f8] sm:$0xff] }
  0xe2   : > { %1542 = vmatprep.mubr.f32.mxu1 %v575_v44  ;;  %2900 = vmatpush1.bf16.msra.mxu0 %v2899_v45  ;;  %v880_v44 = vld [vmem:[%s3926_s9 + $0x5f0] sm:$0xff]  ;;  %v883_v45 = vld [vmem:[%s3926_s9 + $0x608] sm:$0xff]  ;;  %v3061_v35 = vpack.c.bf16 %v913_v27, %v909_v26 }
  0xe3   : > { %3028 = vmatpush1.bf16.msra.mxu1 %v3027_v46  ;;  %2902 = vmatprep.subr.bf16.mxu0 %v2901_v47  ;;  %v887_v46 = vld [vmem:[%s3926_s9 + $0x628] sm:$0xff]  ;;  %v590_v47 = vld [vmem:[%s3916_s26 + $0xe0] sm:$0xff]  ;;  %v3047_v52 = vpack.c.bf16 %v880_v44, %v876_v42  ;;  %v940_v27 = vld [vmem:[%s3926_s9 + $0x7d0] sm:$0xff] }
  0xe4   : > { %1029 = vmatmul.mubr.f32.gmra.mrb[6].mxu0 %v574_v55  ;;  %3030 = vmatprep.subr.bf16.mxu1 %v3029_v51  ;;  %v2919_v51 = vpack.c.bf16 %v878_v41, %v874_v40  ;;  %v2921_v53 = vpack.c.bf16 %v887_v46, %v883_v45  ;;  %v917_v40 = vld [vmem:[%s3926_s9 + $0x718] sm:$0xff]  ;;  %v611_v42 = vld [vmem:[%s3916_s26 + $0x188] sm:$0xff]  ;;  %v914_v46 = vld [vmem:[%s3926_s9 + $0x700] sm:$0xff] }
  0xe5   : > { %1543 = vmatmul.mubr.f32.gmra.mrb[6].mxu1 %v574_v55  ;;  %1034 = vmatprep.mubr.f32.mxu0 %v579_v58  ;;  %v886_v55 = vld [vmem:[%s3926_s9 + $0x620] sm:$0xff]  ;;  %v921_v41 = vld [vmem:[%s3926_s9 + $0x738] sm:$0xff] }
  0xe6   : > { %1548 = vmatprep.mubr.f32.mxu1 %v579_v58  ;;  %2904 = vmatpush1.bf16.msra.mxu0 %v2903_v59  ;;  %v888_v58 = vld [vmem:[%s3926_s9 + $0x630] sm:$0xff]  ;;  %v891_v59 = vld [vmem:[%s3926_s9 + $0x648] sm:$0xff]  ;;  %v3065_v49 = vpack.c.bf16 %v921_v41, %v917_v40  ;;  %v642_v41 = vld [vmem:[%s3916_s26 + $0x280] sm:$0xff] }
  0xe7   : > { %3032 = vmatpush1.bf16.msra.mxu1 %v3031_v60  ;;  %2906 = vmatprep.subr.bf16.mxu0 %v2905_v61  ;;  %v895_v60 = vld [vmem:[%s3926_s9 + $0x668] sm:$0xff]  ;;  %v594_v61 = vld [vmem:[%s3916_s26 + $0x100] sm:$0xff]  ;;  %v3051_v2 = vpack.c.bf16 %v888_v58, %v884_v56 }
  0xe8   : > { %1035 = vmatmul.mubr.f32.gmra.mrb[8].mxu0 %v578_v5  ;;  %3034 = vmatprep.subr.bf16.mxu1 %v3033_v1  ;;  %v2923_v1 = vpack.c.bf16 %v886_v55, %v882_v54  ;;  %v2925_v3 = vpack.c.bf16 %v895_v60, %v891_v59  ;;  %v925_v54 = vld [vmem:[%s3926_s9 + $0x758] sm:$0xff]  ;;  %v615_v56 = vld [vmem:[%s3916_s26 + $0x1a8] sm:$0xff]  ;;  %v922_v60 = vld [vmem:[%s3926_s9 + $0x740] sm:$0xff] }
  0xe9   : > { %1549 = vmatmul.mubr.f32.gmra.mrb[8].mxu1 %v578_v5  ;;  %1040 = vmatprep.mubr.f32.mxu0 %v583_v8  ;;  %v894_v5 = vld [vmem:[%s3926_s9 + $0x660] sm:$0xff]  ;;  %v929_v55 = vld [vmem:[%s3926_s9 + $0x778] sm:$0xff]  ;;  %v643_v40 = vld [vmem:[%s3916_s26 + $0x288] sm:$0xff] }
  0xea   : > { %1554 = vmatprep.mubr.f32.mxu1 %v583_v8  ;;  %2908 = vmatpush1.bf16.msra.mxu0 %v2907_v9  ;;  %v896_v8 = vld [vmem:[%s3926_s9 + $0x670] sm:$0xff]  ;;  %v899_v9 = vld [vmem:[%s3926_s9 + $0x688] sm:$0xff]  ;;  %v3069_v63 = vpack.c.bf16 %v929_v55, %v925_v54  ;;  %v670_v55 = vld [vmem:[%s3916_s26 + $0x360] sm:$0xff] }
  0xeb   : > { %3036 = vmatpush1.bf16.msra.mxu1 %v3035_v10  ;;  %2910 = vmatprep.subr.bf16.mxu0 %v2909_v11  ;;  %v903_v10 = vld [vmem:[%s3926_s9 + $0x6a8] sm:$0xff]  ;;  %v598_v11 = vld [vmem:[%s3916_s26 + $0x120] sm:$0xff]  ;;  %v3055_v16 = vpack.c.bf16 %v896_v8, %v892_v6 }
  0xec   : > { %1041 = vmatmul.mubr.f32.gmra.mrb[10].mxu0 %v582_v19  ;;  %3038 = vmatprep.subr.bf16.mxu1 %v3037_v15  ;;  %v2927_v15 = vpack.c.bf16 %v894_v5, %v890_v4  ;;  %v2929_v17 = vpack.c.bf16 %v903_v10, %v899_v9  ;;  %v933_v4 = vld [vmem:[%s3926_s9 + $0x798] sm:$0xff]  ;;  %v619_v6 = vld [vmem:[%s3916_s26 + $0x1c8] sm:$0xff]  ;;  %v930_v10 = vld [vmem:[%s3926_s9 + $0x780] sm:$0xff] }
  0xed   : > { %1555 = vmatmul.mubr.f32.gmra.mrb[10].mxu1 %v582_v19  ;;  %1046 = vmatprep.mubr.f32.mxu0 %v587_v22  ;;  %v902_v19 = vld [vmem:[%s3926_s9 + $0x6a0] sm:$0xff]  ;;  %v937_v5 = vld [vmem:[%s3926_s9 + $0x7b8] sm:$0xff]  ;;  %v671_v54 = vld [vmem:[%s3916_s26 + $0x368] sm:$0xff] }
  0xee   : > { %1560 = vmatprep.mubr.f32.mxu1 %v587_v22  ;;  %2912 = vmatpush1.bf16.msra.mxu0 %v2911_v23  ;;  %v904_v22 = vld [vmem:[%s3926_s9 + $0x6b0] sm:$0xff]  ;;  %v907_v23 = vld [vmem:[%s3926_s9 + $0x6c8] sm:$0xff]  ;;  %v3073_v13 = vpack.c.bf16 %v937_v5, %v933_v4  ;;  %v573_v4 = vld [vmem:[%s3916_s26 + $0x58] sm:$0xff] }
  0xef   : > { %3040 = vmatpush1.bf16.msra.mxu1 %v3039_v24  ;;  %2914 = vmatprep.subr.bf16.mxu0 %v2913_v25  ;;  %v911_v24 = vld [vmem:[%s3926_s9 + $0x6e8] sm:$0xff]  ;;  %v602_v25 = vld [vmem:[%s3916_s26 + $0x140] sm:$0xff]  ;;  %v3059_v30 = vpack.c.bf16 %v904_v22, %v900_v20  ;;  %v572_v5 = vld [vmem:[%s3916_s26 + $0x50] sm:$0xff] }
  0xf0   : > { %1047 = vmatmul.mubr.f32.gmra.mrb[12].mxu0 %v586_v33  ;;  %3042 = vmatprep.subr.bf16.mxu1 %v3041_v29  ;;  %v2931_v29 = vpack.c.bf16 %v902_v19, %v898_v18  ;;  %v2933_v31 = vpack.c.bf16 %v911_v24, %v907_v23  ;;  %v941_v18 = vld [vmem:[%s3926_s9 + $0x7d8] sm:$0xff]  ;;  %v623_v20 = vld [vmem:[%s3916_s26 + $0x1e8] sm:$0xff]  ;;  %v938_v24 = vld [vmem:[%s3926_s9 + $0x7c0] sm:$0xff] }
  0xf1   : > { %1561 = vmatmul.mubr.f32.gmra.mrb[12].mxu1 %v586_v33  ;;  %1052 = vmatprep.mubr.f32.mxu0 %v591_v36  ;;  %v910_v33 = vld [vmem:[%s3926_s9 + $0x6e0] sm:$0xff]  ;;  %v945_v19 = vld [vmem:[%s3926_s9 + $0x7f8] sm:$0xff] }
  0xf2   : > { %1566 = vmatprep.mubr.f32.mxu1 %v591_v36  ;;  %2916 = vmatpush1.bf16.msra.mxu0 %v2915_v37  ;;  %v912_v36 = vld [vmem:[%s3926_s9 + $0x6f0] sm:$0xff]  ;;  %v915_v37 = vld [vmem:[%s3926_s9 + $0x708] sm:$0xff]  ;;  %v3077_v26 = vpack.c.bf16 %v945_v19, %v941_v18  ;;  %v601_v18 = vld [vmem:[%s3916_s26 + $0x138] sm:$0xff] }
  0xf3   : > { %3044 = vmatpush1.bf16.msra.mxu1 %v3043_v38  ;;  %2918 = vmatprep.subr.bf16.mxu0 %v2917_v39  ;;  %v919_v38 = vld [vmem:[%s3926_s9 + $0x728] sm:$0xff]  ;;  %v606_v39 = vld [vmem:[%s3916_s26 + $0x160] sm:$0xff]  ;;  %v3063_v44 = vpack.c.bf16 %v912_v36, %v908_v34  ;;  %v600_v19 = vld [vmem:[%s3916_s26 + $0x130] sm:$0xff] }
  0xf4   : > { %1053 = vmatmul.mubr.f32.gmra.mrb[14].mxu0 %v590_v47  ;;  %3046 = vmatprep.subr.bf16.mxu1 %v3045_v43  ;;  %v2935_v43 = vpack.c.bf16 %v910_v33, %v906_v32  ;;  %v2937_v45 = vpack.c.bf16 %v919_v38, %v915_v37  ;;  %v626_v33 = vld [vmem:[%s3916_s26 + $0x200] sm:$0xff]  ;;  %v631_v34 = vld [vmem:[%s3916_s26 + $0x228] sm:$0xff] }
  0xf5   : > { %1567 = vmatmul.mubr.f32.gmra.mrb[14].mxu1 %v590_v47  ;;  %1058 = vmatprep.mubr.f32.mxu0 %v595_v50  ;;  %v918_v47 = vld [vmem:[%s3926_s9 + $0x720] sm:$0xff]  ;;  %v635_v36 = vld [vmem:[%s3916_s26 + $0x248] sm:$0xff] }
  0xf6   : > { %1572 = vmatprep.mubr.f32.mxu1 %v595_v50  ;;  %2920 = vmatpush1.bf16.msra.mxu0 %v2919_v51  ;;  %v920_v50 = vld [vmem:[%s3926_s9 + $0x730] sm:$0xff]  ;;  %v923_v51 = vld [vmem:[%s3926_s9 + $0x748] sm:$0xff]  ;;  %v634_v37 = vld [vmem:[%s3916_s26 + $0x240] sm:$0xff] }
  0xf7   : > { %3048 = vmatpush1.bf16.msra.mxu1 %v3047_v52  ;;  %2922 = vmatprep.subr.bf16.mxu0 %v2921_v53  ;;  %v927_v52 = vld [vmem:[%s3926_s9 + $0x768] sm:$0xff]  ;;  %v610_v53 = vld [vmem:[%s3916_s26 + $0x180] sm:$0xff]  ;;  %v3067_v58 = vpack.c.bf16 %v920_v50, %v916_v48 }
  0xf8   : > { %1059 = vmatmul.mubr.f32.gmra.mrb[16].mxu0 %v594_v61  ;;  %3050 = vmatprep.subr.bf16.mxu1 %v3049_v57  ;;  %v2939_v57 = vpack.c.bf16 %v918_v47, %v914_v46  ;;  %v2941_v59 = vpack.c.bf16 %v927_v52, %v923_v51  ;;  %v639_v38 = vld [vmem:[%s3916_s26 + $0x268] sm:$0xff]  ;;  %v654_v47 = vld [vmem:[%s3916_s26 + $0x2e0] sm:$0xff] }
  0xf9   : > { %1573 = vmatmul.mubr.f32.gmra.mrb[16].mxu1 %v594_v61  ;;  %1064 = vmatprep.mubr.f32.mxu0 %v599_v0  ;;  %v926_v61 = vld [vmem:[%s3926_s9 + $0x760] sm:$0xff]  ;;  %v655_v46 = vld [vmem:[%s3916_s26 + $0x2e8] sm:$0xff] }
  0xfa   : > { %1578 = vmatprep.mubr.f32.mxu1 %v599_v0  ;;  %2924 = vmatpush1.bf16.msra.mxu0 %v2923_v1  ;;  %v928_v0 = vld [vmem:[%s3926_s9 + $0x770] sm:$0xff]  ;;  %v931_v1 = vld [vmem:[%s3926_s9 + $0x788] sm:$0xff]  ;;  %v662_v51 = vld [vmem:[%s3916_s26 + $0x320] sm:$0xff] }
  0xfb   : > { %3052 = vmatpush1.bf16.msra.mxu1 %v3051_v2  ;;  %2926 = vmatprep.subr.bf16.mxu0 %v2925_v3  ;;  %v935_v2 = vld [vmem:[%s3926_s9 + $0x7a8] sm:$0xff]  ;;  %v614_v3 = vld [vmem:[%s3916_s26 + $0x1a0] sm:$0xff]  ;;  %v3071_v8 = vpack.c.bf16 %v928_v0, %v924_v62  ;;  %v565_v0 = vld [vmem:[%s3916_s26 + $0x18] sm:$0xff] }
  0xfc   : > { %1065 = vmatmul.mubr.f32.gmra.mrb[18].mxu0 %v598_v11  ;;  %3054 = vmatprep.subr.bf16.mxu1 %v3053_v7  ;;  %v2943_v7 = vpack.c.bf16 %v926_v61, %v922_v60  ;;  %v2945_v9 = vpack.c.bf16 %v935_v2, %v931_v1  ;;  %v659_v48 = vld [vmem:[%s3916_s26 + $0x308] sm:$0xff]  ;;  %v682_v61 = vld [vmem:[%s3916_s26 + $0x3c0] sm:$0xff]  ;;  %v564_v1 = vld [vmem:[%s3916_s26 + $0x10] sm:$0xff] }
  0xfd   : > { %1579 = vmatmul.mubr.f32.gmra.mrb[18].mxu1 %v598_v11  ;;  %1070 = vmatprep.mubr.f32.mxu0 %v603_v14  ;;  %v934_v11 = vld [vmem:[%s3926_s9 + $0x7a0] sm:$0xff]  ;;  %v663_v50 = vld [vmem:[%s3916_s26 + $0x328] sm:$0xff]  ;;  %v569_v2 = vld [vmem:[%s3916_s26 + $0x38] sm:$0xff] }
  0xfe   : > { %1584 = vmatprep.mubr.f32.mxu1 %v603_v14  ;;  %2928 = vmatpush1.bf16.msra.mxu0 %v2927_v15  ;;  %v936_v14 = vld [vmem:[%s3926_s9 + $0x7b0] sm:$0xff]  ;;  %v939_v15 = vld [vmem:[%s3926_s9 + $0x7c8] sm:$0xff] }
  0xff   : > { %3056 = vmatpush1.bf16.msra.mxu1 %v3055_v16  ;;  %2930 = vmatprep.subr.bf16.mxu0 %v2929_v17  ;;  %v943_v16 = vld [vmem:[%s3926_s9 + $0x7e8] sm:$0xff]  ;;  %v618_v17 = vld [vmem:[%s3916_s26 + $0x1c0] sm:$0xff]  ;;  %v3075_v22 = vpack.c.bf16 %v936_v14, %v932_v12  ;;  %v589_v12 = vld [vmem:[%s3916_s26 + $0xd8] sm:$0xff] }
 0x100   : > { %1071 = vmatmul.mubr.f32.gmra.mrb[20].mxu0 %v602_v25  ;;  %3058 = vmatprep.subr.bf16.mxu1 %v3057_v21  ;;  %v2947_v21 = vpack.c.bf16 %v934_v11, %v930_v10  ;;  %v2949_v23 = vpack.c.bf16 %v943_v16, %v939_v15  ;;  %v667_v52 = vld [vmem:[%s3916_s26 + $0x348] sm:$0xff]  ;;  %v585_v10 = vld [vmem:[%s3916_s26 + $0xb8] sm:$0xff]  ;;  %v584_v11 = vld [vmem:[%s3916_s26 + $0xb0] sm:$0xff] }
 0x101   : > { %1585 = vmatmul.mubr.f32.gmra.mrb[20].mxu1 %v602_v25  ;;  %1076 = vmatprep.mubr.f32.mxu0 %v607_v28  ;;  %v942_v25 = vld [vmem:[%s3926_s9 + $0x7e0] sm:$0xff]  ;;  %v683_v60 = vld [vmem:[%s3916_s26 + $0x3c8] sm:$0xff]  ;;  %v593_v14 = vld [vmem:[%s3916_s26 + $0xf8] sm:$0xff] }
 0x102   : > { %1590 = vmatprep.mubr.f32.mxu1 %v607_v28  ;;  %2932 = vmatpush1.bf16.msra.mxu0 %v2931_v29  ;;  %v944_v28 = vld [vmem:[%s3926_s9 + $0x7f0] sm:$0xff]  ;;  %v622_v29 = vld [vmem:[%s3916_s26 + $0x1e0] sm:$0xff]  ;;  %v687_v62 = vld [vmem:[%s3916_s26 + $0x3e8] sm:$0xff]  ;;  %s3448_s9 = scalar_lea.vmem %s3447_s18, 32768 }
 0x103   : > { %3060 = vmatpush1.bf16.msra.mxu1 %v3059_v30  ;;  %2934 = vmatprep.subr.bf16.mxu0 %v2933_v31  ;;  %v627_v30 = vld [vmem:[%s3916_s26 + $0x208] sm:$0xff]  ;;  %v2951_v31 = vpack.c.bf16 %v942_v25, %v938_v24  ;;  %v3079_v32 = vpack.c.bf16 %v944_v28, %v940_v27  ;;  %v592_v15 = vld [vmem:[%s3916_s26 + $0xf0] sm:$0xff]  ;;  %v597_v16 = vld [vmem:[%s3916_s26 + $0x118] sm:$0xff]  ;;  %p3450_p9 = scmp.lt.s32.totalorder %s3448_s9, %s3442_s11 }
 0x104   : > { %1077 = vmatmul.mubr.f32.gmra.mrb[22].mxu0 %v606_v39  ;;  %3062 = vmatprep.subr.bf16.mxu1 %v3061_v35  ;;  %v630_v35 = vld [vmem:[%s3916_s26 + $0x220] sm:$0xff]  ;;  %v613_v24 = vld [vmem:[%s3916_s26 + $0x198] sm:$0xff]  ;;  %v612_v25 = vld [vmem:[%s3916_s26 + $0x190] sm:$0xff] }
 0x105   : > { %1591 = vmatmul.mubr.f32.gmra.mrb[22].mxu1 %v606_v39  ;;  %1082 = vmatprep.mubr.f32.mxu0 %v611_v42  ;;  %v638_v39 = vld [vmem:[%s3916_s26 + $0x260] sm:$0xff]  ;;  %v616_v27 = vld [vmem:[%s3916_s26 + $0x1b0] sm:$0xff]  ;;  %v621_v28 = vld [vmem:[%s3916_s26 + $0x1d8] sm:$0xff]  ;;  %p3451_p4 = por %p3450_p9, %p3449_p3 }
 0x106   : > { %1596 = vmatprep.mubr.f32.mxu1 %v611_v42  ;;  %2936 = vmatpush1.bf16.msra.mxu0 %v2935_v43  ;;  %v647_v42 = vld [vmem:[%s3916_s26 + $0x2a8] sm:$0xff]  ;;  %v646_v43 = vld [vmem:[%s3916_s26 + $0x2a0] sm:$0xff] }
 0x107   : > { %3064 = vmatpush1.bf16.msra.mxu1 %v3063_v44  ;;  %2938 = vmatprep.subr.bf16.mxu0 %v2937_v45  ;;  %v651_v44 = vld [vmem:[%s3916_s26 + $0x2c8] sm:$0xff]  ;;  %v650_v45 = vld [vmem:[%s3916_s26 + $0x2c0] sm:$0xff]  ;;  %p3452_p1 = pnand %p3451_p4, %p3445_p2 }
 0x108   : > { %1083 = vmatmul.mubr.f32.gmra.mrb[24].mxu0 %v610_v53  ;;  %3066 = vmatprep.subr.bf16.mxu1 %v3065_v49  ;;  %v658_v49 = vld [vmem:[%s3916_s26 + $0x300] sm:$0xff] }
 0x109   : > { %1597 = vmatmul.mubr.f32.gmra.mrb[24].mxu1 %v610_v53  ;;  %1088 = vmatprep.mubr.f32.mxu0 %v615_v56  ;;  %v666_v53 = vld [vmem:[%s3916_s26 + $0x340] sm:$0xff] }
 0x10a   : > { %1602 = vmatprep.mubr.f32.mxu1 %v615_v56  ;;  %2940 = vmatpush1.bf16.msra.mxu0 %v2939_v57  ;;  %v675_v56 = vld [vmem:[%s3916_s26 + $0x388] sm:$0xff]  ;;  %v674_v57 = vld [vmem:[%s3916_s26 + $0x380] sm:$0xff] }
 0x10b   : > { %3068 = vmatpush1.bf16.msra.mxu1 %v3067_v58  ;;  %2942 = vmatprep.subr.bf16.mxu0 %v2941_v59  ;;  %v679_v58 = vld [vmem:[%s3916_s26 + $0x3a8] sm:$0xff]  ;;  %v678_v59 = vld [vmem:[%s3916_s26 + $0x3a0] sm:$0xff] }
 0x10c   : > { %1089 = vmatmul.mubr.f32.gmra.mrb[26].mxu0 %v614_v3  ;;  %3070 = vmatprep.subr.bf16.mxu1 %v3069_v63  ;;  %v686_v63 = vld [vmem:[%s3916_s26 + $0x3e0] sm:$0xff] }
 0x10d   : > { %1603 = vmatmul.mubr.f32.gmra.mrb[26].mxu1 %v614_v3  ;;  %1094 = vmatprep.mubr.f32.mxu0 %v619_v6  ;;  %v568_v3 = vld [vmem:[%s3916_s26 + $0x30] sm:$0xff] }
 0x10e   : > { %1608 = vmatprep.mubr.f32.mxu1 %v619_v6  ;;  %2944 = vmatpush1.bf16.msra.mxu0 %v2943_v7  ;;  %v577_v6 = vld [vmem:[%s3916_s26 + $0x78] sm:$0xff]  ;;  %v576_v7 = vld [vmem:[%s3916_s26 + $0x70] sm:$0xff] }
 0x10f   : > { %3072 = vmatpush1.bf16.msra.mxu1 %v3071_v8  ;;  %2946 = vmatprep.subr.bf16.mxu0 %v2945_v9  ;;  %v581_v8 = vld [vmem:[%s3916_s26 + $0x98] sm:$0xff]  ;;  %v580_v9 = vld [vmem:[%s3916_s26 + $0x90] sm:$0xff] }
 0x110   : > { %1095 = vmatmul.mubr.f32.gmra.mrb[28].mxu0 %v618_v17  ;;  %3074 = vmatprep.subr.bf16.mxu1 %v3073_v13  ;;  %v588_v13 = vld [vmem:[%s3916_s26 + $0xd0] sm:$0xff] }
 0x111   : > { %1609 = vmatmul.mubr.f32.gmra.mrb[28].mxu1 %v618_v17  ;;  %1100 = vmatprep.mubr.f32.mxu0 %v623_v20  ;;  %v596_v17 = vld [vmem:[%s3916_s26 + $0x110] sm:$0xff] }
 0x112   : > { %1614 = vmatprep.mubr.f32.mxu1 %v623_v20  ;;  %2948 = vmatpush1.bf16.msra.mxu0 %v2947_v21  ;;  %v605_v20 = vld [vmem:[%s3916_s26 + $0x158] sm:$0xff]  ;;  %v604_v21 = vld [vmem:[%s3916_s26 + $0x150] sm:$0xff] }
 0x113   : > { %3076 = vmatpush1.bf16.msra.mxu1 %v3075_v22  ;;  %2950 = vmatprep.subr.bf16.mxu0 %v2949_v23  ;;  %v609_v22 = vld [vmem:[%s3916_s26 + $0x178] sm:$0xff]  ;;  %v608_v23 = vld [vmem:[%s3916_s26 + $0x170] sm:$0xff] }
 0x114   : > { %1101 = vmatmul.mubr.f32.gmra.mrb[30].mxu0 %v622_v29  ;;  %3078 = vmatprep.subr.bf16.mxu1 %v3077_v26  ;;  %v617_v26 = vld [vmem:[%s3916_s26 + $0x1b8] sm:$0xff] }
 0x115   : > { %1615 = vmatmul.mubr.f32.gmra.mrb[30].mxu1 %v622_v29  ;;  %1106 = vmatprep.mubr.f32.mxu0 %v627_v30  ;;  %v620_v29 = vld [vmem:[%s3916_s26 + $0x1d0] sm:$0xff] }
 0x116   : > { %1620 = vmatprep.mubr.f32.mxu1 %v627_v30  ;;  %2952 = vmatpush1.bf16.msra.mxu0 %v2951_v31  ;;  %v625_v30 = vld [vmem:[%s3916_s26 + $0x1f8] sm:$0xff]  ;;  %v624_v31 = vld [vmem:[%s3916_s26 + $0x1f0] sm:$0xff] }
 0x117   : > { %3080 = vmatpush1.bf16.msra.mxu1 %v3079_v32  ;;  %v629_v32 = vld [vmem:[%s3916_s26 + $0x218] sm:$0xff] }
 0x118   : > { %1107 = vmatmul.mubr.f32.gmra.mrb[32].mxu0 %v626_v33 }
 0x119   : > { %1621 = vmatmul.mubr.f32.gmra.mrb[32].mxu1 %v626_v33  ;;  %1112 = vmatprep.mubr.f32.mxu0 %v631_v34  ;;  %v628_v33 = vld [vmem:[%s3916_s26 + $0x210] sm:$0xff] }
 0x11a   : > { %1626 = vmatprep.mubr.f32.mxu1 %v631_v34  ;;  %v633_v34 = vld [vmem:[%s3916_s26 + $0x238] sm:$0xff] }
 0x11c   : > { %1113 = vmatmul.mubr.f32.gmra.mrb[34].mxu0 %v630_v35 }
 0x11d   : > { %1627 = vmatmul.mubr.f32.gmra.mrb[34].mxu1 %v630_v35  ;;  %1118 = vmatprep.mubr.f32.mxu0 %v635_v36  ;;  %v632_v35 = vld [vmem:[%s3916_s26 + $0x230] sm:$0xff] }
 0x11e   : > { %1632 = vmatprep.mubr.f32.mxu1 %v635_v36  ;;  %v637_v36 = vld [vmem:[%s3916_s26 + $0x258] sm:$0xff] }
 0x120   : > { %1119 = vmatmul.mubr.f32.gmra.mrb[36].mxu0 %v634_v37 }
 0x121   : > { %1633 = vmatmul.mubr.f32.gmra.mrb[36].mxu1 %v634_v37  ;;  %1124 = vmatprep.mubr.f32.mxu0 %v639_v38  ;;  %v636_v37 = vld [vmem:[%s3916_s26 + $0x250] sm:$0xff] }
 0x122   : > { %1638 = vmatprep.mubr.f32.mxu1 %v639_v38  ;;  %v641_v38 = vld [vmem:[%s3916_s26 + $0x278] sm:$0xff] }
 0x124   : > { %1125 = vmatmul.mubr.f32.gmra.mrb[38].mxu0 %v638_v39 }
 0x125   : > { %1639 = vmatmul.mubr.f32.gmra.mrb[38].mxu1 %v638_v39  ;;  %1130 = vmatprep.mubr.f32.mxu0 %v643_v40  ;;  %v640_v39 = vld [vmem:[%s3916_s26 + $0x270] sm:$0xff] }
 0x126   : > { %1644 = vmatprep.mubr.f32.mxu1 %v643_v40  ;;  %v645_v40 = vld [vmem:[%s3916_s26 + $0x298] sm:$0xff] }
 0x128   : > { %1131 = vmatmul.mubr.f32.gmra.mrb[40].mxu0 %v642_v41 }
 0x129   : > { %1645 = vmatmul.mubr.f32.gmra.mrb[40].mxu1 %v642_v41  ;;  %1136 = vmatprep.mubr.f32.mxu0 %v647_v42  ;;  %v644_v41 = vld [vmem:[%s3916_s26 + $0x290] sm:$0xff] }
 0x12a   : > { %1650 = vmatprep.mubr.f32.mxu1 %v647_v42  ;;  %v649_v42 = vld [vmem:[%s3916_s26 + $0x2b8] sm:$0xff] }
 0x12c   : > { %1137 = vmatmul.mubr.f32.gmra.mrb[42].mxu0 %v646_v43 }
 0x12d   : > { %1651 = vmatmul.mubr.f32.gmra.mrb[42].mxu1 %v646_v43  ;;  %1142 = vmatprep.mubr.f32.mxu0 %v651_v44  ;;  %v648_v43 = vld [vmem:[%s3916_s26 + $0x2b0] sm:$0xff] }
 0x12e   : > { %1656 = vmatprep.mubr.f32.mxu1 %v651_v44  ;;  %v653_v44 = vld [vmem:[%s3916_s26 + $0x2d8] sm:$0xff] }
 0x130   : > { %1143 = vmatmul.mubr.f32.gmra.mrb[44].mxu0 %v650_v45 }
 0x131   : > { %1657 = vmatmul.mubr.f32.gmra.mrb[44].mxu1 %v650_v45  ;;  %1148 = vmatprep.mubr.f32.mxu0 %v655_v46  ;;  %v652_v45 = vld [vmem:[%s3916_s26 + $0x2d0] sm:$0xff] }
 0x132   : > { %1662 = vmatprep.mubr.f32.mxu1 %v655_v46  ;;  %v657_v46 = vld [vmem:[%s3916_s26 + $0x2f8] sm:$0xff] }
 0x134   : > { %1149 = vmatmul.mubr.f32.gmra.mrb[46].mxu0 %v654_v47 }
 0x135   : > { %1663 = vmatmul.mubr.f32.gmra.mrb[46].mxu1 %v654_v47  ;;  %1154 = vmatprep.mubr.f32.mxu0 %v659_v48  ;;  %v656_v47 = vld [vmem:[%s3916_s26 + $0x2f0] sm:$0xff] }
 0x136   : > { %1668 = vmatprep.mubr.f32.mxu1 %v659_v48  ;;  %v661_v48 = vld [vmem:[%s3916_s26 + $0x318] sm:$0xff] }
 0x138   : > { %1155 = vmatmul.mubr.f32.gmra.mrb[48].mxu0 %v658_v49 }
 0x139   : > { %1669 = vmatmul.mubr.f32.gmra.mrb[48].mxu1 %v658_v49  ;;  %1160 = vmatprep.mubr.f32.mxu0 %v663_v50  ;;  %v660_v49 = vld [vmem:[%s3916_s26 + $0x310] sm:$0xff] }
 0x13a   : > { %1674 = vmatprep.mubr.f32.mxu1 %v663_v50  ;;  %v665_v50 = vld [vmem:[%s3916_s26 + $0x338] sm:$0xff] }
 0x13c   : > { %1161 = vmatmul.mubr.f32.gmra.mrb[50].mxu0 %v662_v51 }
 0x13d   : > { %1675 = vmatmul.mubr.f32.gmra.mrb[50].mxu1 %v662_v51  ;;  %1166 = vmatprep.mubr.f32.mxu0 %v667_v52  ;;  %v664_v51 = vld [vmem:[%s3916_s26 + $0x330] sm:$0xff] }
 0x13e   : > { %1680 = vmatprep.mubr.f32.mxu1 %v667_v52  ;;  %v669_v52 = vld [vmem:[%s3916_s26 + $0x358] sm:$0xff] }
 0x140   : > { %1167 = vmatmul.mubr.f32.gmra.mrb[52].mxu0 %v666_v53 }
 0x141   : > { %1681 = vmatmul.mubr.f32.gmra.mrb[52].mxu1 %v666_v53  ;;  %1172 = vmatprep.mubr.f32.mxu0 %v671_v54  ;;  %v668_v53 = vld [vmem:[%s3916_s26 + $0x350] sm:$0xff] }
 0x142   : > { %1686 = vmatprep.mubr.f32.mxu1 %v671_v54  ;;  %v673_v54 = vld [vmem:[%s3916_s26 + $0x378] sm:$0xff] }
 0x144   : > { %1173 = vmatmul.mubr.f32.gmra.mrb[54].mxu0 %v670_v55 }
 0x145   : > { %1687 = vmatmul.mubr.f32.gmra.mrb[54].mxu1 %v670_v55  ;;  %1178 = vmatprep.mubr.f32.mxu0 %v675_v56  ;;  %v672_v55 = vld [vmem:[%s3916_s26 + $0x370] sm:$0xff] }
 0x146   : > { %1692 = vmatprep.mubr.f32.mxu1 %v675_v56  ;;  %v677_v56 = vld [vmem:[%s3916_s26 + $0x398] sm:$0xff] }
 0x148   : > { %1179 = vmatmul.mubr.f32.gmra.mrb[56].mxu0 %v674_v57 }
 0x149   : > { %1693 = vmatmul.mubr.f32.gmra.mrb[56].mxu1 %v674_v57  ;;  %1184 = vmatprep.mubr.f32.mxu0 %v679_v58  ;;  %v676_v57 = vld [vmem:[%s3916_s26 + $0x390] sm:$0xff] }
 0x14a   : > { %1698 = vmatprep.mubr.f32.mxu1 %v679_v58  ;;  %v681_v58 = vld [vmem:[%s3916_s26 + $0x3b8] sm:$0xff] }
 0x14c   : > { %1185 = vmatmul.mubr.f32.gmra.mrb[58].mxu0 %v678_v59 }
 0x14d   : > { %1699 = vmatmul.mubr.f32.gmra.mrb[58].mxu1 %v678_v59  ;;  %1190 = vmatprep.mubr.f32.mxu0 %v683_v60  ;;  %v680_v59 = vld [vmem:[%s3916_s26 + $0x3b0] sm:$0xff] }
 0x14e   : > { %1704 = vmatprep.mubr.f32.mxu1 %v683_v60  ;;  %v685_v60 = vld [vmem:[%s3916_s26 + $0x3d8] sm:$0xff] }
 0x150   : > { %1191 = vmatmul.mubr.f32.gmra.mrb[60].mxu0 %v682_v61 }
 0x151   : > { %1705 = vmatmul.mubr.f32.gmra.mrb[60].mxu1 %v682_v61  ;;  %1196 = vmatprep.mubr.f32.mxu0 %v687_v62  ;;  %v684_v61 = vld [vmem:[%s3916_s26 + $0x3d0] sm:$0xff] }
 0x152   : > { %1710 = vmatprep.mubr.f32.mxu1 %v687_v62  ;;  %v689_v62 = vld [vmem:[%s3916_s26 + $0x3f8] sm:$0xff] }
 0x154   : > { %1197 = vmatmul.mubr.f32.gmra.mrb[62].mxu0 %v686_v63 }
 0x155   : > { %1711 = vmatmul.mubr.f32.gmra.mrb[62].mxu1 %v686_v63  ;;  %1267 = vmatprep.mubr.f32.mxu0 %v565_v0  ;;  %v688_v63 = vld [vmem:[%s3916_s26 + $0x3f0] sm:$0xff]  ;;  %s4736_s26 = smov %s4735_s23 }
 0x156   : > { %1781 = vmatprep.mubr.f32.mxu1 %v565_v0  ;;  %v2363_v0 = vlaneseq }
 0x158   : > { %1268 = vmatmul.mubr.f32.vlgmr.msra.gmra.mrb[0].mxu0 %v564_v1 }
 0x159   : > { %1782 = vmatmul.mubr.f32.vlgmr.msra.gmra.mrb[0].mxu1 %v564_v1  ;;  %1273 = vmatprep.mubr.f32.mxu0 %v569_v2  ;;  %v2364_v1 = vshrl.u32 %v2363_v0, 7 }
 0x15a   : > { %1787 = vmatprep.mubr.f32.mxu1 %v569_v2 }
 0x15b   : > { %v2365_v2 = vsub.s32 0, %v2364_v1 }
 0x15c   : > { %1274 = vmatmul.mubr.f32.gmra.mrb[2].mxu0 %v568_v3 }
 0x15d   : > { %1788 = vmatmul.mubr.f32.gmra.mrb[2].mxu1 %v568_v3  ;;  %1279 = vmatprep.mubr.f32.mxu0 %v573_v4  ;;  %v2361_v3 = vld [vmem:[%s262_s27] sm:$0xf] }
 0x15e   : > { %1793 = vmatprep.mubr.f32.mxu1 %v573_v4  ;;  %v2373_v4 = vsub.s32 2, %v2364_v1 }
 0x160   : > { %1280 = vmatmul.mubr.f32.gmra.mrb[4].mxu0 %v572_v5 }
 0x161   : > { %1794 = vmatmul.mubr.f32.gmra.mrb[4].mxu1 %v572_v5  ;;  %1285 = vmatprep.mubr.f32.mxu0 %v577_v6  ;;  %v2369_v5 = vsub.s32 1, %v2364_v1 }
 0x162   : > { %1799 = vmatprep.mubr.f32.mxu1 %v577_v6  ;;  %v2377_v6 = vsub.s32 3, %v2364_v1 }
 0x164   : > { %1286 = vmatmul.mubr.f32.gmra.mrb[6].mxu0 %v576_v7 }
 0x165   : > { %1800 = vmatmul.mubr.f32.gmra.mrb[6].mxu1 %v576_v7  ;;  %1291 = vmatprep.mubr.f32.mxu0 %v581_v8  ;;  %v4321_v7 = vrot.slane %v2361_v3, %v2365_v2 }
 0x166   : > { %1805 = vmatprep.mubr.f32.mxu1 %v581_v8  ;;  %v4323_v8 = vrot.slane %v2361_v3, %v2373_v4 }
 0x168   : > { %1292 = vmatmul.mubr.f32.gmra.mrb[8].mxu0 %v580_v9 }
 0x169   : > { %1806 = vmatmul.mubr.f32.gmra.mrb[8].mxu1 %v580_v9  ;;  %1297 = vmatprep.mubr.f32.mxu0 %v585_v10  ;;  %v4325_v9 = vrot.slane %v2361_v3, %v2369_v5 }
 0x16a   : > { %1811 = vmatprep.mubr.f32.mxu1 %v585_v10  ;;  %v4327_v10 = vrot.slane %v2361_v3, %v2377_v6 }
 0x16c   : > { %1298 = vmatmul.mubr.f32.gmra.mrb[10].mxu0 %v584_v11 }
 0x16d   : > { %1812 = vmatmul.mubr.f32.gmra.mrb[10].mxu1 %v584_v11  ;;  %1303 = vmatprep.mubr.f32.mxu0 %v589_v12 }
 0x16e   : > { %1817 = vmatprep.mubr.f32.mxu1 %v589_v12 }
 0x170   : > { %1304 = vmatmul.mubr.f32.gmra.mrb[12].mxu0 %v588_v13 }
 0x171   : > { %1818 = vmatmul.mubr.f32.gmra.mrb[12].mxu1 %v588_v13  ;;  %1309 = vmatprep.mubr.f32.mxu0 %v593_v14 }
 0x172   : > { %1823 = vmatprep.mubr.f32.mxu1 %v593_v14 }
 0x174   : > { %1310 = vmatmul.mubr.f32.gmra.mrb[14].mxu0 %v592_v15 }
 0x175   : > { %1824 = vmatmul.mubr.f32.gmra.mrb[14].mxu1 %v592_v15  ;;  %1315 = vmatprep.mubr.f32.mxu0 %v597_v16 }
 0x176   : > { %1829 = vmatprep.mubr.f32.mxu1 %v597_v16 }
 0x178   : > { %1316 = vmatmul.mubr.f32.gmra.mrb[16].mxu0 %v596_v17 }
 0x179   : > { %1830 = vmatmul.mubr.f32.gmra.mrb[16].mxu1 %v596_v17  ;;  %1321 = vmatprep.mubr.f32.mxu0 %v601_v18 }
 0x17a   : > { %1835 = vmatprep.mubr.f32.mxu1 %v601_v18 }
 0x17c   : > { %1322 = vmatmul.mubr.f32.gmra.mrb[18].mxu0 %v600_v19 }
 0x17d   : > { %1836 = vmatmul.mubr.f32.gmra.mrb[18].mxu1 %v600_v19  ;;  %1327 = vmatprep.mubr.f32.mxu0 %v605_v20 }
 0x17e   : > { %1841 = vmatprep.mubr.f32.mxu1 %v605_v20 }
 0x180   : > { %1328 = vmatmul.mubr.f32.gmra.mrb[20].mxu0 %v604_v21 }
 0x181   : > { %1842 = vmatmul.mubr.f32.gmra.mrb[20].mxu1 %v604_v21  ;;  %1333 = vmatprep.mubr.f32.mxu0 %v609_v22 }
 0x182   : > { %1847 = vmatprep.mubr.f32.mxu1 %v609_v22 }
 0x184   : > { %1334 = vmatmul.mubr.f32.gmra.mrb[22].mxu0 %v608_v23 }
 0x185   : > { %1848 = vmatmul.mubr.f32.gmra.mrb[22].mxu1 %v608_v23  ;;  %1339 = vmatprep.mubr.f32.mxu0 %v613_v24 }
 0x186   : > { %1853 = vmatprep.mubr.f32.mxu1 %v613_v24 }
 0x188   : > { %1340 = vmatmul.mubr.f32.gmra.mrb[24].mxu0 %v612_v25 }
 0x189   : > { %1854 = vmatmul.mubr.f32.gmra.mrb[24].mxu1 %v612_v25  ;;  %1345 = vmatprep.mubr.f32.mxu0 %v617_v26 }
 0x18a   : > { %1859 = vmatprep.mubr.f32.mxu1 %v617_v26 }
 0x18c   : > { %1346 = vmatmul.mubr.f32.gmra.mrb[26].mxu0 %v616_v27 }
 0x18d   : > { %1860 = vmatmul.mubr.f32.gmra.mrb[26].mxu1 %v616_v27  ;;  %1351 = vmatprep.mubr.f32.mxu0 %v621_v28 }
 0x18e   : > { %1865 = vmatprep.mubr.f32.mxu1 %v621_v28 }
 0x190   : > { %1352 = vmatmul.mubr.f32.gmra.mrb[28].mxu0 %v620_v29 }
 0x191   : > { %1866 = vmatmul.mubr.f32.gmra.mrb[28].mxu1 %v620_v29  ;;  %1357 = vmatprep.mubr.f32.mxu0 %v625_v30 }
 0x192   : > { %1871 = vmatprep.mubr.f32.mxu1 %v625_v30 }
 0x194   : > { %1358 = vmatmul.mubr.f32.gmra.mrb[30].mxu0 %v624_v31 }
 0x195   : > { %1872 = vmatmul.mubr.f32.gmra.mrb[30].mxu1 %v624_v31  ;;  %1363 = vmatprep.mubr.f32.mxu0 %v629_v32 }
 0x196   : > { %1877 = vmatprep.mubr.f32.mxu1 %v629_v32 }
 0x198   : > { %1364 = vmatmul.mubr.f32.gmra.mrb[32].mxu0 %v628_v33 }
 0x199   : > { %1878 = vmatmul.mubr.f32.gmra.mrb[32].mxu1 %v628_v33  ;;  %1369 = vmatprep.mubr.f32.mxu0 %v633_v34 }
 0x19a   : > { %1883 = vmatprep.mubr.f32.mxu1 %v633_v34 }
 0x19c   : > { %1370 = vmatmul.mubr.f32.gmra.mrb[34].mxu0 %v632_v35 }
 0x19d   : > { %1884 = vmatmul.mubr.f32.gmra.mrb[34].mxu1 %v632_v35  ;;  %1375 = vmatprep.mubr.f32.mxu0 %v637_v36 }
 0x19e   : > { %1889 = vmatprep.mubr.f32.mxu1 %v637_v36 }
 0x1a0   : > { %1376 = vmatmul.mubr.f32.gmra.mrb[36].mxu0 %v636_v37 }
 0x1a1   : > { %1890 = vmatmul.mubr.f32.gmra.mrb[36].mxu1 %v636_v37  ;;  %1381 = vmatprep.mubr.f32.mxu0 %v641_v38 }
 0x1a2   : > { %1895 = vmatprep.mubr.f32.mxu1 %v641_v38 }
 0x1a4   : > { %1382 = vmatmul.mubr.f32.gmra.mrb[38].mxu0 %v640_v39 }
 0x1a5   : > { %1896 = vmatmul.mubr.f32.gmra.mrb[38].mxu1 %v640_v39  ;;  %1387 = vmatprep.mubr.f32.mxu0 %v645_v40 }
 0x1a6   : > { %1901 = vmatprep.mubr.f32.mxu1 %v645_v40 }
 0x1a8   : > { %1388 = vmatmul.mubr.f32.gmra.mrb[40].mxu0 %v644_v41 }
 0x1a9   : > { %1902 = vmatmul.mubr.f32.gmra.mrb[40].mxu1 %v644_v41  ;;  %1393 = vmatprep.mubr.f32.mxu0 %v649_v42 }
 0x1aa   : > { %1907 = vmatprep.mubr.f32.mxu1 %v649_v42 }
 0x1ac   : > { %1394 = vmatmul.mubr.f32.gmra.mrb[42].mxu0 %v648_v43 }
 0x1ad   : > { %1908 = vmatmul.mubr.f32.gmra.mrb[42].mxu1 %v648_v43  ;;  %1399 = vmatprep.mubr.f32.mxu0 %v653_v44 }
 0x1ae   : > { %1913 = vmatprep.mubr.f32.mxu1 %v653_v44 }
 0x1b0   : > { %1400 = vmatmul.mubr.f32.gmra.mrb[44].mxu0 %v652_v45 }
 0x1b1   : > { %1914 = vmatmul.mubr.f32.gmra.mrb[44].mxu1 %v652_v45  ;;  %1405 = vmatprep.mubr.f32.mxu0 %v657_v46 }
 0x1b2   : > { %1919 = vmatprep.mubr.f32.mxu1 %v657_v46 }
 0x1b4   : > { %1406 = vmatmul.mubr.f32.gmra.mrb[46].mxu0 %v656_v47 }
 0x1b5   : > { %1920 = vmatmul.mubr.f32.gmra.mrb[46].mxu1 %v656_v47  ;;  %1411 = vmatprep.mubr.f32.mxu0 %v661_v48 }
 0x1b6   : > { %1925 = vmatprep.mubr.f32.mxu1 %v661_v48 }
 0x1b8   : > { %1412 = vmatmul.mubr.f32.gmra.mrb[48].mxu0 %v660_v49 }
 0x1b9   : > { %1926 = vmatmul.mubr.f32.gmra.mrb[48].mxu1 %v660_v49  ;;  %1417 = vmatprep.mubr.f32.mxu0 %v665_v50 }
 0x1ba   : > { %1931 = vmatprep.mubr.f32.mxu1 %v665_v50 }
 0x1bc   : > { %1418 = vmatmul.mubr.f32.gmra.mrb[50].mxu0 %v664_v51 }
 0x1bd   : > { %1932 = vmatmul.mubr.f32.gmra.mrb[50].mxu1 %v664_v51  ;;  %1423 = vmatprep.mubr.f32.mxu0 %v669_v52 }
 0x1be   : > { %1937 = vmatprep.mubr.f32.mxu1 %v669_v52 }
 0x1c0   : > { %1424 = vmatmul.mubr.f32.gmra.mrb[52].mxu0 %v668_v53 }
 0x1c1   : > { %1938 = vmatmul.mubr.f32.gmra.mrb[52].mxu1 %v668_v53  ;;  %1429 = vmatprep.mubr.f32.mxu0 %v673_v54 }
 0x1c2   : > { %1943 = vmatprep.mubr.f32.mxu1 %v673_v54 }
 0x1c4   : > { %1430 = vmatmul.mubr.f32.gmra.mrb[54].mxu0 %v672_v55 }
 0x1c5   : > { %1944 = vmatmul.mubr.f32.gmra.mrb[54].mxu1 %v672_v55  ;;  %1435 = vmatprep.mubr.f32.mxu0 %v677_v56 }
 0x1c6   : > { %1949 = vmatprep.mubr.f32.mxu1 %v677_v56 }
 0x1c8   : > { %1436 = vmatmul.mubr.f32.gmra.mrb[56].mxu0 %v676_v57 }
 0x1c9   : > { %1950 = vmatmul.mubr.f32.gmra.mrb[56].mxu1 %v676_v57  ;;  %1441 = vmatprep.mubr.f32.mxu0 %v681_v58 }
 0x1ca   : > { %1955 = vmatprep.mubr.f32.mxu1 %v681_v58 }
 0x1cc   : > { %1442 = vmatmul.mubr.f32.gmra.mrb[58].mxu0 %v680_v59 }
 0x1cd   : > { %1956 = vmatmul.mubr.f32.gmra.mrb[58].mxu1 %v680_v59  ;;  %1447 = vmatprep.mubr.f32.mxu0 %v685_v60 }
 0x1ce   : > { %1961 = vmatprep.mubr.f32.mxu1 %v685_v60 }
 0x1d0   : > { %1448 = vmatmul.mubr.f32.gmra.mrb[60].mxu0 %v684_v61 }
 0x1d1   : > { %1962 = vmatmul.mubr.f32.gmra.mrb[60].mxu1 %v684_v61  ;;  %1453 = vmatprep.mubr.f32.mxu0 %v689_v62 }
 0x1d2   : > { %1967 = vmatprep.mubr.f32.mxu1 %v689_v62 }
 0x1d4   : > { %1454 = vmatmul.mubr.f32.gmra.mrb[62].mxu0 %v688_v63 }
 0x1d5   : > { %1968 = vmatmul.mubr.f32.gmra.mrb[62].mxu1 %v688_v63 }
 0x22b   : > { %v1269_v11 = vpop.f32.mrb[0].mxu0 }
 0x22c   : > { %v2383_v12 = vadd.f32 %v4321_v7, %v1269_v11  ;;  %v1783_v13 = vpop.f32.mrb[0].mxu1  ;;  %v1271_v14 = vpop.f32.mrb[1].mxu0 }
 0x22d   : > { %v2385_v15 = vadd.f32 %v4323_v8, %v1783_v13  ;;  %v2384_v16 = vadd.f32 %v4325_v9, %v1271_v14  ;;  %v1785_v17 = vpop.f32.mrb[1].mxu1 }
 0x22e   : > { %2511 = vst [vmem:[%s4332_s6] sm:$0xff] %v2383_v12  ;;  %v2386_v18 = vadd.f32 %v4327_v10, %v1785_v17 }
 0x22f   : > { %2513 = vst [vmem:[%s4332_s6 + $0x10] sm:$0xff] %v2385_v15  ;;  %2512 = vst [vmem:[%s4332_s6 + $0x8] sm:$0xff] %v2384_v16  ;;  %v1275_v19 = vpop.f32.mrb[2].mxu0 }
 0x230   : > { %2514 = vst [vmem:[%s4332_s6 + $0x18] sm:$0xff] %v2386_v18  ;;  %v2387_v20 = vadd.f32 %v4321_v7, %v1275_v19  ;;  %v1789_v21 = vpop.f32.mrb[2].mxu1  ;;  %v1277_v22 = vpop.f32.mrb[3].mxu0 }
 0x231   : > { %v2389_v23 = vadd.f32 %v4323_v8, %v1789_v21  ;;  %v2388_v24 = vadd.f32 %v4325_v9, %v1277_v22  ;;  %v1791_v25 = vpop.f32.mrb[3].mxu1 }
 0x232   : > { %2515 = vst [vmem:[%s4332_s6 + $0x20] sm:$0xff] %v2387_v20  ;;  %v2390_v26 = vadd.f32 %v4327_v10, %v1791_v25 }
 0x233   : > { %2517 = vst [vmem:[%s4332_s6 + $0x30] sm:$0xff] %v2389_v23  ;;  %2516 = vst [vmem:[%s4332_s6 + $0x28] sm:$0xff] %v2388_v24  ;;  %v1281_v27 = vpop.f32.mrb[4].mxu0 }
 0x234   : > { %2518 = vst [vmem:[%s4332_s6 + $0x38] sm:$0xff] %v2390_v26  ;;  %v2391_v28 = vadd.f32 %v4321_v7, %v1281_v27  ;;  %v1795_v29 = vpop.f32.mrb[4].mxu1  ;;  %v1283_v30 = vpop.f32.mrb[5].mxu0 }
 0x235   : > { %v2393_v31 = vadd.f32 %v4323_v8, %v1795_v29  ;;  %v2392_v32 = vadd.f32 %v4325_v9, %v1283_v30  ;;  %v1797_v33 = vpop.f32.mrb[5].mxu1 }
 0x236   : > { %2519 = vst [vmem:[%s4332_s6 + $0x40] sm:$0xff] %v2391_v28  ;;  %v2394_v34 = vadd.f32 %v4327_v10, %v1797_v33 }
 0x237   : > { %2521 = vst [vmem:[%s4332_s6 + $0x50] sm:$0xff] %v2393_v31  ;;  %2520 = vst [vmem:[%s4332_s6 + $0x48] sm:$0xff] %v2392_v32  ;;  %v1287_v35 = vpop.f32.mrb[6].mxu0 }
 0x238   : > { %2522 = vst [vmem:[%s4332_s6 + $0x58] sm:$0xff] %v2394_v34  ;;  %v2395_v36 = vadd.f32 %v4321_v7, %v1287_v35  ;;  %v1801_v37 = vpop.f32.mrb[6].mxu1  ;;  %v1289_v38 = vpop.f32.mrb[7].mxu0 }
 0x239   : > { %v2397_v39 = vadd.f32 %v4323_v8, %v1801_v37  ;;  %v2396_v40 = vadd.f32 %v4325_v9, %v1289_v38  ;;  %v1803_v41 = vpop.f32.mrb[7].mxu1 }
 0x23a   : > { %2523 = vst [vmem:[%s4332_s6 + $0x60] sm:$0xff] %v2395_v36  ;;  %v2398_v42 = vadd.f32 %v4327_v10, %v1803_v41 }
 0x23b   : > { %2525 = vst [vmem:[%s4332_s6 + $0x70] sm:$0xff] %v2397_v39  ;;  %2524 = vst [vmem:[%s4332_s6 + $0x68] sm:$0xff] %v2396_v40  ;;  %v1293_v43 = vpop.f32.mrb[8].mxu0 }
 0x23c   : > { %2526 = vst [vmem:[%s4332_s6 + $0x78] sm:$0xff] %v2398_v42  ;;  %v2399_v44 = vadd.f32 %v4321_v7, %v1293_v43  ;;  %v1807_v45 = vpop.f32.mrb[8].mxu1  ;;  %v1295_v46 = vpop.f32.mrb[9].mxu0 }
 0x23d   : > { %v2401_v47 = vadd.f32 %v4323_v8, %v1807_v45  ;;  %v2400_v48 = vadd.f32 %v4325_v9, %v1295_v46  ;;  %v1809_v49 = vpop.f32.mrb[9].mxu1 }
 0x23e   : > { %2527 = vst [vmem:[%s4332_s6 + $0x80] sm:$0xff] %v2399_v44  ;;  %v2402_v50 = vadd.f32 %v4327_v10, %v1809_v49 }
 0x23f   : > { %2529 = vst [vmem:[%s4332_s6 + $0x90] sm:$0xff] %v2401_v47  ;;  %2528 = vst [vmem:[%s4332_s6 + $0x88] sm:$0xff] %v2400_v48  ;;  %v1299_v51 = vpop.f32.mrb[10].mxu0 }
 0x240   : > { %2530 = vst [vmem:[%s4332_s6 + $0x98] sm:$0xff] %v2402_v50  ;;  %v2403_v52 = vadd.f32 %v4321_v7, %v1299_v51  ;;  %v1813_v53 = vpop.f32.mrb[10].mxu1  ;;  %v1301_v54 = vpop.f32.mrb[11].mxu0 }
 0x241   : > { %v2405_v55 = vadd.f32 %v4323_v8, %v1813_v53  ;;  %v2404_v56 = vadd.f32 %v4325_v9, %v1301_v54  ;;  %v1815_v57 = vpop.f32.mrb[11].mxu1 }
 0x242   : > { %2531 = vst [vmem:[%s4332_s6 + $0xa0] sm:$0xff] %v2403_v52  ;;  %v2406_v58 = vadd.f32 %v4327_v10, %v1815_v57 }
 0x243   : > { %2533 = vst [vmem:[%s4332_s6 + $0xb0] sm:$0xff] %v2405_v55  ;;  %2532 = vst [vmem:[%s4332_s6 + $0xa8] sm:$0xff] %v2404_v56  ;;  %v1305_v59 = vpop.f32.mrb[12].mxu0 }
 0x244   : > { %2534 = vst [vmem:[%s4332_s6 + $0xb8] sm:$0xff] %v2406_v58  ;;  %v2407_v60 = vadd.f32 %v4321_v7, %v1305_v59  ;;  %v1819_v61 = vpop.f32.mrb[12].mxu1  ;;  %v1307_v62 = vpop.f32.mrb[13].mxu0 }
 0x245   : > { %v2409_v63 = vadd.f32 %v4323_v8, %v1819_v61  ;;  %v2408_v0 = vadd.f32 %v4325_v9, %v1307_v62  ;;  %v1821_v1 = vpop.f32.mrb[13].mxu1 }
 0x246   : > { %2535 = vst [vmem:[%s4332_s6 + $0xc0] sm:$0xff] %v2407_v60  ;;  %v2410_v2 = vadd.f32 %v4327_v10, %v1821_v1 }
 0x247   : > { %2537 = vst [vmem:[%s4332_s6 + $0xd0] sm:$0xff] %v2409_v63  ;;  %2536 = vst [vmem:[%s4332_s6 + $0xc8] sm:$0xff] %v2408_v0  ;;  %v1311_v3 = vpop.f32.mrb[14].mxu0 }
 0x248   : > { %2538 = vst [vmem:[%s4332_s6 + $0xd8] sm:$0xff] %v2410_v2  ;;  %v2411_v4 = vadd.f32 %v4321_v7, %v1311_v3  ;;  %v1825_v5 = vpop.f32.mrb[14].mxu1  ;;  %v1313_v6 = vpop.f32.mrb[15].mxu0 }
 0x249   : > { %v2413_v11 = vadd.f32 %v4323_v8, %v1825_v5  ;;  %v2412_v12 = vadd.f32 %v4325_v9, %v1313_v6  ;;  %v1827_v13 = vpop.f32.mrb[15].mxu1 }
 0x24a   : > { %2539 = vst [vmem:[%s4332_s6 + $0xe0] sm:$0xff] %v2411_v4  ;;  %v2414_v14 = vadd.f32 %v4327_v10, %v1827_v13 }
 0x24b   : > { %2541 = vst [vmem:[%s4332_s6 + $0xf0] sm:$0xff] %v2413_v11  ;;  %2540 = vst [vmem:[%s4332_s6 + $0xe8] sm:$0xff] %v2412_v12  ;;  %v1317_v15 = vpop.f32.mrb[16].mxu0 }
 0x24c   : > { %2542 = vst [vmem:[%s4332_s6 + $0xf8] sm:$0xff] %v2414_v14  ;;  %v2415_v16 = vadd.f32 %v4321_v7, %v1317_v15  ;;  %v1831_v17 = vpop.f32.mrb[16].mxu1  ;;  %v1319_v18 = vpop.f32.mrb[17].mxu0 }
 0x24d   : > { %v2417_v19 = vadd.f32 %v4323_v8, %v1831_v17  ;;  %v2416_v20 = vadd.f32 %v4325_v9, %v1319_v18  ;;  %v1833_v21 = vpop.f32.mrb[17].mxu1 }
 0x24e   : > { %2543 = vst [vmem:[%s4332_s6 + $0x100] sm:$0xff] %v2415_v16  ;;  %v2418_v22 = vadd.f32 %v4327_v10, %v1833_v21 }
 0x24f   : > { %2545 = vst [vmem:[%s4332_s6 + $0x110] sm:$0xff] %v2417_v19  ;;  %2544 = vst [vmem:[%s4332_s6 + $0x108] sm:$0xff] %v2416_v20  ;;  %v1323_v23 = vpop.f32.mrb[18].mxu0 }
 0x250   : > { %2546 = vst [vmem:[%s4332_s6 + $0x118] sm:$0xff] %v2418_v22  ;;  %v2419_v24 = vadd.f32 %v4321_v7, %v1323_v23  ;;  %v1837_v25 = vpop.f32.mrb[18].mxu1  ;;  %v1325_v26 = vpop.f32.mrb[19].mxu0 }
 0x251   : > { %v2421_v27 = vadd.f32 %v4323_v8, %v1837_v25  ;;  %v2420_v28 = vadd.f32 %v4325_v9, %v1325_v26  ;;  %v1839_v29 = vpop.f32.mrb[19].mxu1 }
 0x252   : > { %2547 = vst [vmem:[%s4332_s6 + $0x120] sm:$0xff] %v2419_v24  ;;  %v2422_v30 = vadd.f32 %v4327_v10, %v1839_v29 }
 0x253   : > { %2549 = vst [vmem:[%s4332_s6 + $0x130] sm:$0xff] %v2421_v27  ;;  %2548 = vst [vmem:[%s4332_s6 + $0x128] sm:$0xff] %v2420_v28  ;;  %v1329_v31 = vpop.f32.mrb[20].mxu0 }
 0x254   : > { %2550 = vst [vmem:[%s4332_s6 + $0x138] sm:$0xff] %v2422_v30  ;;  %v2423_v32 = vadd.f32 %v4321_v7, %v1329_v31  ;;  %v1843_v33 = vpop.f32.mrb[20].mxu1  ;;  %v1331_v34 = vpop.f32.mrb[21].mxu0 }
 0x255   : > { %v2425_v35 = vadd.f32 %v4323_v8, %v1843_v33  ;;  %v2424_v36 = vadd.f32 %v4325_v9, %v1331_v34  ;;  %v1845_v37 = vpop.f32.mrb[21].mxu1 }
 0x256   : > { %2551 = vst [vmem:[%s4332_s6 + $0x140] sm:$0xff] %v2423_v32  ;;  %v2426_v38 = vadd.f32 %v4327_v10, %v1845_v37 }
 0x257   : > { %2553 = vst [vmem:[%s4332_s6 + $0x150] sm:$0xff] %v2425_v35  ;;  %2552 = vst [vmem:[%s4332_s6 + $0x148] sm:$0xff] %v2424_v36  ;;  %v1335_v39 = vpop.f32.mrb[22].mxu0 }
 0x258   : > { %2554 = vst [vmem:[%s4332_s6 + $0x158] sm:$0xff] %v2426_v38  ;;  %v2427_v40 = vadd.f32 %v4321_v7, %v1335_v39  ;;  %v1849_v41 = vpop.f32.mrb[22].mxu1  ;;  %v1337_v42 = vpop.f32.mrb[23].mxu0 }
 0x259   : > { %v2429_v43 = vadd.f32 %v4323_v8, %v1849_v41  ;;  %v2428_v44 = vadd.f32 %v4325_v9, %v1337_v42  ;;  %v1851_v45 = vpop.f32.mrb[23].mxu1 }
 0x25a   : > { %2555 = vst [vmem:[%s4332_s6 + $0x160] sm:$0xff] %v2427_v40  ;;  %v2430_v46 = vadd.f32 %v4327_v10, %v1851_v45 }
 0x25b   : > { %2557 = vst [vmem:[%s4332_s6 + $0x170] sm:$0xff] %v2429_v43  ;;  %2556 = vst [vmem:[%s4332_s6 + $0x168] sm:$0xff] %v2428_v44  ;;  %v1341_v47 = vpop.f32.mrb[24].mxu0 }
 0x25c   : > { %2558 = vst [vmem:[%s4332_s6 + $0x178] sm:$0xff] %v2430_v46  ;;  %v2431_v48 = vadd.f32 %v4321_v7, %v1341_v47  ;;  %v1855_v49 = vpop.f32.mrb[24].mxu1  ;;  %v1343_v50 = vpop.f32.mrb[25].mxu0 }
 0x25d   : > { %v2433_v51 = vadd.f32 %v4323_v8, %v1855_v49  ;;  %v2432_v52 = vadd.f32 %v4325_v9, %v1343_v50  ;;  %v1857_v53 = vpop.f32.mrb[25].mxu1 }
 0x25e   : > { %2559 = vst [vmem:[%s4332_s6 + $0x180] sm:$0xff] %v2431_v48  ;;  %v2434_v54 = vadd.f32 %v4327_v10, %v1857_v53 }
 0x25f   : > { %2561 = vst [vmem:[%s4332_s6 + $0x190] sm:$0xff] %v2433_v51  ;;  %2560 = vst [vmem:[%s4332_s6 + $0x188] sm:$0xff] %v2432_v52  ;;  %v1347_v55 = vpop.f32.mrb[26].mxu0 }
 0x260   : > { %2562 = vst [vmem:[%s4332_s6 + $0x198] sm:$0xff] %v2434_v54  ;;  %v2435_v56 = vadd.f32 %v4321_v7, %v1347_v55  ;;  %v1861_v57 = vpop.f32.mrb[26].mxu1  ;;  %v1349_v58 = vpop.f32.mrb[27].mxu0 }
 0x261   : > { %v2437_v59 = vadd.f32 %v4323_v8, %v1861_v57  ;;  %v2436_v60 = vadd.f32 %v4325_v9, %v1349_v58  ;;  %v1863_v61 = vpop.f32.mrb[27].mxu1 }
 0x262   : > { %2563 = vst [vmem:[%s4332_s6 + $0x1a0] sm:$0xff] %v2435_v56  ;;  %v2438_v62 = vadd.f32 %v4327_v10, %v1863_v61 }
 0x263   : > { %2565 = vst [vmem:[%s4332_s6 + $0x1b0] sm:$0xff] %v2437_v59  ;;  %2564 = vst [vmem:[%s4332_s6 + $0x1a8] sm:$0xff] %v2436_v60  ;;  %v1353_v63 = vpop.f32.mrb[28].mxu0 }
 0x264   : > { %2566 = vst [vmem:[%s4332_s6 + $0x1b8] sm:$0xff] %v2438_v62  ;;  %v2439_v0 = vadd.f32 %v4321_v7, %v1353_v63  ;;  %v1867_v1 = vpop.f32.mrb[28].mxu1  ;;  %v1355_v2 = vpop.f32.mrb[29].mxu0 }
 0x265   : > { %v2441_v3 = vadd.f32 %v4323_v8, %v1867_v1  ;;  %v2440_v4 = vadd.f32 %v4325_v9, %v1355_v2  ;;  %v1869_v5 = vpop.f32.mrb[29].mxu1 }
 0x266   : > { %2567 = vst [vmem:[%s4332_s6 + $0x1c0] sm:$0xff] %v2439_v0  ;;  %v2442_v6 = vadd.f32 %v4327_v10, %v1869_v5 }
 0x267   : > { %2569 = vst [vmem:[%s4332_s6 + $0x1d0] sm:$0xff] %v2441_v3  ;;  %2568 = vst [vmem:[%s4332_s6 + $0x1c8] sm:$0xff] %v2440_v4  ;;  %v1359_v11 = vpop.f32.mrb[30].mxu0 }
 0x268   : > { %2570 = vst [vmem:[%s4332_s6 + $0x1d8] sm:$0xff] %v2442_v6  ;;  %v2443_v12 = vadd.f32 %v4321_v7, %v1359_v11  ;;  %v1873_v13 = vpop.f32.mrb[30].mxu1  ;;  %v1361_v14 = vpop.f32.mrb[31].mxu0 }
 0x269   : > { %v2445_v15 = vadd.f32 %v4323_v8, %v1873_v13  ;;  %v2444_v16 = vadd.f32 %v4325_v9, %v1361_v14  ;;  %v1875_v17 = vpop.f32.mrb[31].mxu1 }
 0x26a   : > { %2571 = vst [vmem:[%s4332_s6 + $0x1e0] sm:$0xff] %v2443_v12  ;;  %v2446_v18 = vadd.f32 %v4327_v10, %v1875_v17 }
 0x26b   : > { %2573 = vst [vmem:[%s4332_s6 + $0x1f0] sm:$0xff] %v2445_v15  ;;  %2572 = vst [vmem:[%s4332_s6 + $0x1e8] sm:$0xff] %v2444_v16  ;;  %v1365_v19 = vpop.f32.mrb[32].mxu0 }
 0x26c   : > { %2574 = vst [vmem:[%s4332_s6 + $0x1f8] sm:$0xff] %v2446_v18  ;;  %v2447_v20 = vadd.f32 %v4321_v7, %v1365_v19  ;;  %v1879_v21 = vpop.f32.mrb[32].mxu1  ;;  %v1367_v22 = vpop.f32.mrb[33].mxu0 }
 0x26d   : > { %v2449_v23 = vadd.f32 %v4323_v8, %v1879_v21  ;;  %v2448_v24 = vadd.f32 %v4325_v9, %v1367_v22  ;;  %v1881_v25 = vpop.f32.mrb[33].mxu1 }
 0x26e   : > { %2575 = vst [vmem:[%s4332_s6 + $0x200] sm:$0xff] %v2447_v20  ;;  %v2450_v26 = vadd.f32 %v4327_v10, %v1881_v25 }
 0x26f   : > { %2577 = vst [vmem:[%s4332_s6 + $0x210] sm:$0xff] %v2449_v23  ;;  %2576 = vst [vmem:[%s4332_s6 + $0x208] sm:$0xff] %v2448_v24  ;;  %v1371_v27 = vpop.f32.mrb[34].mxu0 }
 0x270   : > { %2578 = vst [vmem:[%s4332_s6 + $0x218] sm:$0xff] %v2450_v26  ;;  %v2451_v28 = vadd.f32 %v4321_v7, %v1371_v27  ;;  %v1885_v29 = vpop.f32.mrb[34].mxu1  ;;  %v1373_v30 = vpop.f32.mrb[35].mxu0 }
 0x271   : > { %v2453_v31 = vadd.f32 %v4323_v8, %v1885_v29  ;;  %v2452_v32 = vadd.f32 %v4325_v9, %v1373_v30  ;;  %v1887_v33 = vpop.f32.mrb[35].mxu1 }
 0x272   : > { %2579 = vst [vmem:[%s4332_s6 + $0x220] sm:$0xff] %v2451_v28  ;;  %v2454_v34 = vadd.f32 %v4327_v10, %v1887_v33 }
 0x273   : > { %2581 = vst [vmem:[%s4332_s6 + $0x230] sm:$0xff] %v2453_v31  ;;  %2580 = vst [vmem:[%s4332_s6 + $0x228] sm:$0xff] %v2452_v32  ;;  %v1377_v35 = vpop.f32.mrb[36].mxu0 }
 0x274   : > { %2582 = vst [vmem:[%s4332_s6 + $0x238] sm:$0xff] %v2454_v34  ;;  %v2455_v36 = vadd.f32 %v4321_v7, %v1377_v35  ;;  %v1891_v37 = vpop.f32.mrb[36].mxu1  ;;  %v1379_v38 = vpop.f32.mrb[37].mxu0 }
 0x275   : > { %v2457_v39 = vadd.f32 %v4323_v8, %v1891_v37  ;;  %v2456_v40 = vadd.f32 %v4325_v9, %v1379_v38  ;;  %v1893_v41 = vpop.f32.mrb[37].mxu1 }
 0x276   : > { %2583 = vst [vmem:[%s4332_s6 + $0x240] sm:$0xff] %v2455_v36  ;;  %v2458_v42 = vadd.f32 %v4327_v10, %v1893_v41 }
 0x277   : > { %2585 = vst [vmem:[%s4332_s6 + $0x250] sm:$0xff] %v2457_v39  ;;  %2584 = vst [vmem:[%s4332_s6 + $0x248] sm:$0xff] %v2456_v40  ;;  %v1383_v43 = vpop.f32.mrb[38].mxu0 }
 0x278   : > { %2586 = vst [vmem:[%s4332_s6 + $0x258] sm:$0xff] %v2458_v42  ;;  %v2459_v44 = vadd.f32 %v4321_v7, %v1383_v43  ;;  %v1897_v45 = vpop.f32.mrb[38].mxu1  ;;  %v1385_v46 = vpop.f32.mrb[39].mxu0 }
 0x279   : > { %v2461_v47 = vadd.f32 %v4323_v8, %v1897_v45  ;;  %v2460_v48 = vadd.f32 %v4325_v9, %v1385_v46  ;;  %v1899_v49 = vpop.f32.mrb[39].mxu1 }
 0x27a   : > { %2587 = vst [vmem:[%s4332_s6 + $0x260] sm:$0xff] %v2459_v44  ;;  %v2462_v50 = vadd.f32 %v4327_v10, %v1899_v49 }
 0x27b   : > { %2589 = vst [vmem:[%s4332_s6 + $0x270] sm:$0xff] %v2461_v47  ;;  %2588 = vst [vmem:[%s4332_s6 + $0x268] sm:$0xff] %v2460_v48  ;;  %v1389_v51 = vpop.f32.mrb[40].mxu0 }
 0x27c   : > { %2590 = vst [vmem:[%s4332_s6 + $0x278] sm:$0xff] %v2462_v50  ;;  %v2463_v52 = vadd.f32 %v4321_v7, %v1389_v51  ;;  %v1903_v53 = vpop.f32.mrb[40].mxu1  ;;  %v1391_v54 = vpop.f32.mrb[41].mxu0 }
 0x27d   : > { %v2465_v55 = vadd.f32 %v4323_v8, %v1903_v53  ;;  %v2464_v56 = vadd.f32 %v4325_v9, %v1391_v54  ;;  %v1905_v57 = vpop.f32.mrb[41].mxu1 }
 0x27e   : > { %2591 = vst [vmem:[%s4332_s6 + $0x280] sm:$0xff] %v2463_v52  ;;  %v2466_v58 = vadd.f32 %v4327_v10, %v1905_v57 }
 0x27f   : > { %2593 = vst [vmem:[%s4332_s6 + $0x290] sm:$0xff] %v2465_v55  ;;  %2592 = vst [vmem:[%s4332_s6 + $0x288] sm:$0xff] %v2464_v56  ;;  %v1395_v59 = vpop.f32.mrb[42].mxu0 }
 0x280   : > { %2594 = vst [vmem:[%s4332_s6 + $0x298] sm:$0xff] %v2466_v58  ;;  %v2467_v60 = vadd.f32 %v4321_v7, %v1395_v59  ;;  %v1909_v61 = vpop.f32.mrb[42].mxu1  ;;  %v1397_v62 = vpop.f32.mrb[43].mxu0 }
 0x281   : > { %v2469_v63 = vadd.f32 %v4323_v8, %v1909_v61  ;;  %v2468_v0 = vadd.f32 %v4325_v9, %v1397_v62  ;;  %v1911_v1 = vpop.f32.mrb[43].mxu1 }
 0x282   : > { %2595 = vst [vmem:[%s4332_s6 + $0x2a0] sm:$0xff] %v2467_v60  ;;  %v2470_v2 = vadd.f32 %v4327_v10, %v1911_v1 }
 0x283   : > { %2597 = vst [vmem:[%s4332_s6 + $0x2b0] sm:$0xff] %v2469_v63  ;;  %2596 = vst [vmem:[%s4332_s6 + $0x2a8] sm:$0xff] %v2468_v0  ;;  %v1401_v3 = vpop.f32.mrb[44].mxu0 }
 0x284   : > { %2598 = vst [vmem:[%s4332_s6 + $0x2b8] sm:$0xff] %v2470_v2  ;;  %v2471_v4 = vadd.f32 %v4321_v7, %v1401_v3  ;;  %v1915_v5 = vpop.f32.mrb[44].mxu1  ;;  %v1403_v6 = vpop.f32.mrb[45].mxu0 }
 0x285   : > { %v2473_v11 = vadd.f32 %v4323_v8, %v1915_v5  ;;  %v2472_v12 = vadd.f32 %v4325_v9, %v1403_v6  ;;  %v1917_v13 = vpop.f32.mrb[45].mxu1 }
 0x286   : > { %2599 = vst [vmem:[%s4332_s6 + $0x2c0] sm:$0xff] %v2471_v4  ;;  %v2474_v14 = vadd.f32 %v4327_v10, %v1917_v13 }
 0x287   : > { %2601 = vst [vmem:[%s4332_s6 + $0x2d0] sm:$0xff] %v2473_v11  ;;  %2600 = vst [vmem:[%s4332_s6 + $0x2c8] sm:$0xff] %v2472_v12  ;;  %v1407_v15 = vpop.f32.mrb[46].mxu0 }
 0x288   : > { %2602 = vst [vmem:[%s4332_s6 + $0x2d8] sm:$0xff] %v2474_v14  ;;  %v2475_v16 = vadd.f32 %v4321_v7, %v1407_v15  ;;  %v1921_v17 = vpop.f32.mrb[46].mxu1  ;;  %v1409_v18 = vpop.f32.mrb[47].mxu0 }
 0x289   : > { %v2477_v19 = vadd.f32 %v4323_v8, %v1921_v17  ;;  %v2476_v20 = vadd.f32 %v4325_v9, %v1409_v18  ;;  %v1923_v21 = vpop.f32.mrb[47].mxu1 }
 0x28a   : > { %2603 = vst [vmem:[%s4332_s6 + $0x2e0] sm:$0xff] %v2475_v16  ;;  %v2478_v22 = vadd.f32 %v4327_v10, %v1923_v21 }
 0x28b   : > { %2605 = vst [vmem:[%s4332_s6 + $0x2f0] sm:$0xff] %v2477_v19  ;;  %2604 = vst [vmem:[%s4332_s6 + $0x2e8] sm:$0xff] %v2476_v20  ;;  %v1413_v23 = vpop.f32.mrb[48].mxu0 }
 0x28c   : > { %2606 = vst [vmem:[%s4332_s6 + $0x2f8] sm:$0xff] %v2478_v22  ;;  %v2479_v24 = vadd.f32 %v4321_v7, %v1413_v23  ;;  %v1927_v25 = vpop.f32.mrb[48].mxu1  ;;  %v1415_v26 = vpop.f32.mrb[49].mxu0 }
 0x28d   : > { %v2481_v27 = vadd.f32 %v4323_v8, %v1927_v25  ;;  %v2480_v28 = vadd.f32 %v4325_v9, %v1415_v26  ;;  %v1929_v29 = vpop.f32.mrb[49].mxu1 }
 0x28e   : > { %2607 = vst [vmem:[%s4332_s6 + $0x300] sm:$0xff] %v2479_v24  ;;  %v2482_v30 = vadd.f32 %v4327_v10, %v1929_v29 }
 0x28f   : > { %2609 = vst [vmem:[%s4332_s6 + $0x310] sm:$0xff] %v2481_v27  ;;  %2608 = vst [vmem:[%s4332_s6 + $0x308] sm:$0xff] %v2480_v28  ;;  %v1419_v31 = vpop.f32.mrb[50].mxu0 }
 0x290   : > { %2610 = vst [vmem:[%s4332_s6 + $0x318] sm:$0xff] %v2482_v30  ;;  %v2483_v32 = vadd.f32 %v4321_v7, %v1419_v31  ;;  %v1933_v33 = vpop.f32.mrb[50].mxu1  ;;  %v1421_v34 = vpop.f32.mrb[51].mxu0 }
 0x291   : > { %v2485_v35 = vadd.f32 %v4323_v8, %v1933_v33  ;;  %v2484_v36 = vadd.f32 %v4325_v9, %v1421_v34  ;;  %v1935_v37 = vpop.f32.mrb[51].mxu1 }
 0x292   : > { %2611 = vst [vmem:[%s4332_s6 + $0x320] sm:$0xff] %v2483_v32  ;;  %v2486_v38 = vadd.f32 %v4327_v10, %v1935_v37 }
 0x293   : > { %2613 = vst [vmem:[%s4332_s6 + $0x330] sm:$0xff] %v2485_v35  ;;  %2612 = vst [vmem:[%s4332_s6 + $0x328] sm:$0xff] %v2484_v36  ;;  %v1425_v39 = vpop.f32.mrb[52].mxu0 }
 0x294   : > { %2614 = vst [vmem:[%s4332_s6 + $0x338] sm:$0xff] %v2486_v38  ;;  %v2487_v40 = vadd.f32 %v4321_v7, %v1425_v39  ;;  %v1939_v41 = vpop.f32.mrb[52].mxu1  ;;  %v1427_v42 = vpop.f32.mrb[53].mxu0 }
 0x295   : > { %v2489_v43 = vadd.f32 %v4323_v8, %v1939_v41  ;;  %v2488_v44 = vadd.f32 %v4325_v9, %v1427_v42  ;;  %v1941_v45 = vpop.f32.mrb[53].mxu1 }
 0x296   : > { %2615 = vst [vmem:[%s4332_s6 + $0x340] sm:$0xff] %v2487_v40  ;;  %v2490_v46 = vadd.f32 %v4327_v10, %v1941_v45 }
 0x297   : > { %2617 = vst [vmem:[%s4332_s6 + $0x350] sm:$0xff] %v2489_v43  ;;  %2616 = vst [vmem:[%s4332_s6 + $0x348] sm:$0xff] %v2488_v44  ;;  %v1431_v47 = vpop.f32.mrb[54].mxu0 }
 0x298   : > { %2618 = vst [vmem:[%s4332_s6 + $0x358] sm:$0xff] %v2490_v46  ;;  %v2491_v48 = vadd.f32 %v4321_v7, %v1431_v47  ;;  %v1945_v49 = vpop.f32.mrb[54].mxu1  ;;  %v1433_v50 = vpop.f32.mrb[55].mxu0 }
 0x299   : > { %v2493_v51 = vadd.f32 %v4323_v8, %v1945_v49  ;;  %v2492_v52 = vadd.f32 %v4325_v9, %v1433_v50  ;;  %v1947_v53 = vpop.f32.mrb[55].mxu1 }
 0x29a   : > { %2619 = vst [vmem:[%s4332_s6 + $0x360] sm:$0xff] %v2491_v48  ;;  %v2494_v54 = vadd.f32 %v4327_v10, %v1947_v53 }
 0x29b   : > { %2621 = vst [vmem:[%s4332_s6 + $0x370] sm:$0xff] %v2493_v51  ;;  %2620 = vst [vmem:[%s4332_s6 + $0x368] sm:$0xff] %v2492_v52  ;;  %v1437_v55 = vpop.f32.mrb[56].mxu0 }
 0x29c   : > { %2622 = vst [vmem:[%s4332_s6 + $0x378] sm:$0xff] %v2494_v54  ;;  %v2495_v56 = vadd.f32 %v4321_v7, %v1437_v55  ;;  %v1951_v57 = vpop.f32.mrb[56].mxu1  ;;  %v1439_v58 = vpop.f32.mrb[57].mxu0 }
 0x29d   : > { %v2497_v59 = vadd.f32 %v4323_v8, %v1951_v57  ;;  %v2496_v60 = vadd.f32 %v4325_v9, %v1439_v58  ;;  %v1953_v61 = vpop.f32.mrb[57].mxu1 }
 0x29e   : > { %2623 = vst [vmem:[%s4332_s6 + $0x380] sm:$0xff] %v2495_v56  ;;  %v2498_v62 = vadd.f32 %v4327_v10, %v1953_v61 }
 0x29f   : > { %2625 = vst [vmem:[%s4332_s6 + $0x390] sm:$0xff] %v2497_v59  ;;  %2624 = vst [vmem:[%s4332_s6 + $0x388] sm:$0xff] %v2496_v60  ;;  %v1443_v63 = vpop.f32.mrb[58].mxu0 }
 0x2a0   : > { %2626 = vst [vmem:[%s4332_s6 + $0x398] sm:$0xff] %v2498_v62  ;;  %v2499_v0 = vadd.f32 %v4321_v7, %v1443_v63  ;;  %v1957_v1 = vpop.f32.mrb[58].mxu1  ;;  %v1445_v2 = vpop.f32.mrb[59].mxu0 }
 0x2a1   : > { %v2501_v3 = vadd.f32 %v4323_v8, %v1957_v1  ;;  %v2500_v4 = vadd.f32 %v4325_v9, %v1445_v2  ;;  %v1959_v5 = vpop.f32.mrb[59].mxu1 }
 0x2a2   : > { %2627 = vst [vmem:[%s4332_s6 + $0x3a0] sm:$0xff] %v2499_v0  ;;  %v2502_v6 = vadd.f32 %v4327_v10, %v1959_v5 }
 0x2a3   : > { %2629 = vst [vmem:[%s4332_s6 + $0x3b0] sm:$0xff] %v2501_v3  ;;  %2628 = vst [vmem:[%s4332_s6 + $0x3a8] sm:$0xff] %v2500_v4  ;;  %v1449_v11 = vpop.f32.mrb[60].mxu0 }
 0x2a4   : > { %2630 = vst [vmem:[%s4332_s6 + $0x3b8] sm:$0xff] %v2502_v6  ;;  %v2503_v12 = vadd.f32 %v4321_v7, %v1449_v11  ;;  %v1963_v13 = vpop.f32.mrb[60].mxu1  ;;  %v1451_v14 = vpop.f32.mrb[61].mxu0 }
 0x2a5   : > { %v2505_v15 = vadd.f32 %v4323_v8, %v1963_v13  ;;  %v2504_v16 = vadd.f32 %v4325_v9, %v1451_v14  ;;  %v1965_v17 = vpop.f32.mrb[61].mxu1 }
 0x2a6   : > { %2631 = vst [vmem:[%s4332_s6 + $0x3c0] sm:$0xff] %v2503_v12  ;;  %v2506_v18 = vadd.f32 %v4327_v10, %v1965_v17 }
 0x2a7   : > { %2633 = vst [vmem:[%s4332_s6 + $0x3d0] sm:$0xff] %v2505_v15  ;;  %2632 = vst [vmem:[%s4332_s6 + $0x3c8] sm:$0xff] %v2504_v16  ;;  %v1455_v19 = vpop.f32.mrb[62].mxu0 }
 0x2a8   : > { %2634 = vst [vmem:[%s4332_s6 + $0x3d8] sm:$0xff] %v2506_v18  ;;  %v2507_v20 = vadd.f32 %v4321_v7, %v1455_v19  ;;  %v1969_v21 = vpop.f32.mrb[62].mxu1  ;;  %v1457_v22 = vpop.f32.mrb[63].mxu0 }
 0x2a9   : > { %v2509_v23 = vadd.f32 %v4323_v8, %v1969_v21  ;;  %v2508_v24 = vadd.f32 %v4325_v9, %v1457_v22  ;;  %v1971_v25 = vpop.f32.mrb[63].mxu1 }
 0x2aa   : > { %2635 = vst [vmem:[%s4332_s6 + $0x3e0] sm:$0xff] %v2507_v20  ;;  %v2510_v7 = vadd.f32 %v4327_v10, %v1971_v25 }
 0x2ab   : > { %2637 = vst [vmem:[%s4332_s6 + $0x3f0] sm:$0xff] %v2509_v23  ;;  %2636 = vst [vmem:[%s4332_s6 + $0x3e8] sm:$0xff] %v2508_v24 }
 0x2ac   : > { %2638 = vst [vmem:[%s4332_s6 + $0x3f8] sm:$0xff] %v2510_v7 }
 0x2ad   : > { %3455 = shalt.err (!%p3452_p1)
}
 0x2ae   : > { %s3456_s7 = scalar_lea.hbm %s4586_s15, 16384  ;;  %s3460_s10 = scalar_lea.hbm %s4736_s26, 98304 }
 0x2af   : > { %p3457_p0 = scmp.ne.s32.totalorder %s4586_s15, %s3456_s7  ;;  %p3461_p8 = scmp.lt.u32.totalorder %s4586_s15, %s4736_s26 }
 0x2b0   : > { %p3462_p10 = scmp.lt.u32.totalorder %s3460_s10, %s3456_s7  ;;  %p3464_p7 = scmp.lt.u32.totalorder %s3456_s7, %s4586_s15 }
 0x2b1   : > { %p3458_p12 = pnand %p3457_p0, %p4737_p11 }
 0x2b2   : > { %p3463_p6 = por %p3462_p10, %p3461_p8 }
 0x2b3   : > { %p3459_p13 = pneg %p3458_p12 }
 0x2b4   : > { %p3465_p5 = por %p3464_p7, %p3463_p6 }
 0x2b6   : > { %p3466_p2 = pnand %p3465_p5, %p3459_p13 }
 0x2b8   : > { %3469 = shalt.err (!%p3466_p2)
}
 0x2b9   : > { %s3601_s1 = smov 512   ;;  %s3602_s17 = smov 1536  }
 0x2ba   : > { %s3603_s22 = smov 32  }
 0x2bb   : > { %3216 = dma.vmem_to_hbm [thread:$0]  (%p4737_p11), %s4590_s21, 16384, %s4586_s15, %s4599_s30, %s3601_s1, %s3602_s17, %s3603_s22  }
 0x2bc PF: > { %p3233_p3 = scmp.ge.s32.totalorder %s3592_s25, 2  ;;  %s2671_s3 = sand.u32 1, %s3540_s12  }
 0x2bd   : > { %p4738_p9 = scmp.ne.s32.totalorder %s4722_s8, 0  ;;  %s2672_s20 = scalar_lea.sflag [#allocation5], %s2671_s3 }
 0x2bf   : > { %p3229_p4 = pnand %p3233_p3, %p4738_p9 }
 0x2c1   : > { %3535 = dma.done.wait (!%p3229_p4), %s2672_s20, 16384  }
 0x2c2   : > { %3537 = vsyncadd (!%p3229_p4), %s2672_s20, 4294950912  ;;  %s22_s25 = sadd.s32 1, %s3592_s25   ;;  %s4740_s28 = sld [smem:[#allocation13_spill]] }
 0x2c3   : > { %p4628_p1 = scmp.ge.s32.totalorder %s22_s25, 8   ;;  %s4741_s14 = sld [smem:[#allocation24_spill]] }
 0x2c4   : > { %s4742_s21 = sld [smem:[#allocation14_spill]]  ;;  %s4743_s17 = sld [smem:[#allocation22_spill]] }
 0x2c5   : > { %s4744_s23 = sld [smem:[#allocation15_spill]]  ;;  %s4745_s20 = sld [smem:[#allocation23_spill]] }
 0x2c6   : > { %s4746_s8 = sld [smem:[#allocation18_spill]]  ;;  %s4747_s22 = sld [smem:[#allocation19_spill]] }
 0x2c7   : > { %s4748_s30 = sld [smem:[#allocation20_spill]]  ;;  %s4749_s24 = sld [smem:[#allocation21_spill]] }
 0x2c8   : > { %s4750_s12 = smov %s3544_s13  ;;  %s4751_s13 = smov %s4740_s28 }
 0x2c9   : > { %s4752_s15 = smov %s3556_s16  ;;  %s4754_s18 = smov %s3568_s19 }
 0x2ca   : > { %s4753_s16 = smov %s4742_s21  ;;  %21 = sbr.rel (!%p4628_p1) target bundleno = 15 (0xf), region = 109 }
 0x2cb   : > { %s4755_s19 = smov %s4744_s23 }
 0x2cc   : > { %s4756_s21 = smov %s4746_s8 }
 0x2cd   : > { %s4757_s23 = smov %s4748_s30 }
 0x2d1   :  { %2677 = vsyncpa [#allocation4], 1 }
 0x2d2   :  { %2679 = vsyncpa [#allocation4 + $0x1], 1 }
 0x2d3   :  { %2680 = vsyncpa [#allocation7], 1 }
 0x2d4   :  { %2682 = vsyncpa [#allocation7 + $0x1], 1 }
 0x2d5   :  { %2683 = vsyncpa [#allocation5], 1 }
 0x2d6   :  { %2685 = vsyncpa [#allocation5 + $0x1], 1 }

</bundles_post_ra>
